<compile_context>
chip_gen: v7x
topology: tpu7x:2x2x1
jax: 0.10.0
libtpu: 0.0.40
codegen_flags: <defaults>
</compile_context>

<pallas_src>
import functools

import numpy as np
import jax
import jax.numpy as jnp
from jax.experimental import pallas as pl
from jax.experimental.pallas import tpu as pltpu


# --------------------------------------------------------------------------------------
# Block-size pickers
# --------------------------------------------------------------------------------------

def _pick_window_block(n_win_per_img, total_windows, cap=16):
    """Largest W_BLK <= cap dividing nW (so the mask index_map is exact), preferring >=2 grid steps."""
    cap = min(cap, n_win_per_img)
    for w in range(cap, 0, -1):
        if n_win_per_img % w == 0 and total_windows // w >= 2:
            return w
    return n_win_per_img


def _pick_row_block(total, cap=512):
    """Largest row tile <= cap dividing `total` and a multiple of 8, preferring >=2 grid steps."""
    cap = min(cap, total)
    best = None
    for r in range(cap, 7, -1):
        if total % r == 0 and r % 8 == 0:
            if total // r >= 2:
                return r
            if best is None:
                best = r
    return best if best is not None else total


# --------------------------------------------------------------------------------------
# Pallas kernels
# --------------------------------------------------------------------------------------

def _win_attn_kernel(*refs, num_heads, scale, has_mask):
    """Fused: LayerNorm1 -> window MSA (rel-pos bias [+ shift mask]) -> proj -> + shortcut."""
    if has_mask:
        (x_ref, mask_ref, g_ref, b_ref, qkvw_ref, qkvb_ref,
         projw_ref, projb_ref, bias_ref, o_ref) = refs
    else:
        (x_ref, g_ref, b_ref, qkvw_ref, qkvb_ref,
         projw_ref, projb_ref, bias_ref, o_ref) = refs
        mask_ref = None

    x = x_ref[...].astype(jnp.float32)                       # (Wb, N, C) shortcut
    Wb, N, C = x.shape
    hd = C // num_heads

    # LayerNorm (norm1), fp32 stats.
    mu = jnp.mean(x, axis=-1, keepdims=True)
    var = jnp.mean(jnp.square(x - mu), axis=-1, keepdims=True)
    xn = (x - mu) * jax.lax.rsqrt(var + 1e-5) * g_ref[...] + b_ref[...]

    # One big QKV matmul over all batched windows (bf16 operands, f32 accumulation).
    xb = xn.astype(jnp.bfloat16).reshape(Wb * N, C)
    qkv = jnp.dot(xb, qkvw_ref[...], preferred_element_type=jnp.float32) + qkvb_ref[...]
    qkv = qkv.reshape(Wb, N, 3 * C)

    if has_mask:
        mask = mask_ref[...].astype(jnp.float32)              # (Wb, N, N)

    out = None                                                # (Wb*N, C) accumulator
    for h in range(num_heads):
        q = qkv[:, :, h * hd:(h + 1) * hd].astype(jnp.bfloat16)
        k = qkv[:, :, C + h * hd:C + (h + 1) * hd].astype(jnp.bfloat16)
        v = qkv[:, :, 2 * C + h * hd:2 * C + (h + 1) * hd].astype(jnp.bfloat16)

        attn = jnp.einsum('wnd,wmd->wnm', q, k,
                          preferred_element_type=jnp.float32) * scale   # (Wb, N, N)
        attn = attn + bias_ref[h]
        if has_mask:
            attn = attn + mask

        m = jnp.max(attn, axis=-1, keepdims=True)
        e = jnp.exp(attn - m)
        p = e * pl.reciprocal(jnp.sum(e, axis=-1, keepdims=True), approx=True)

        o_h = jnp.einsum('wnm,wmd->wnd', p.astype(jnp.bfloat16), v,
                         preferred_element_type=jnp.float32)            # (Wb, N, hd)
        # Distribute the output projection over heads -> no concatenate needed.
        contrib = jnp.dot(o_h.astype(jnp.bfloat16).reshape(Wb * N, hd), projw_ref[h],
                          preferred_element_type=jnp.float32)           # (Wb*N, C)
        out = contrib if out is None else out + contrib

    out = (out + projb_ref[...]).reshape(Wb, N, C)
    o_ref[...] = (x + out).astype(o_ref.dtype)                # fused shortcut residual


def _mlp_kernel(x_ref, g_ref, b_ref, w1_ref, b1_ref, w2_ref, b2_ref, o_ref):
    """Fused: LayerNorm2 -> fc1 -> GELU -> fc2 -> + residual, on a (R, C) row tile."""
    x = x_ref[...].astype(jnp.float32)                        # (R, C)
    mu = jnp.mean(x, axis=-1, keepdims=True)
    var = jnp.mean(jnp.square(x - mu), axis=-1, keepdims=True)
    xn = (x - mu) * jax.lax.rsqrt(var + 1e-5) * g_ref[...] + b_ref[...]

    h = jnp.dot(xn.astype(jnp.bfloat16), w1_ref[...],
                preferred_element_type=jnp.float32) + b1_ref[...]
    # TODO(synk): PyTorch nn.GELU default is exact (erf-based); using tanh approximation
    #             for guaranteed Mosaic lowering.
    h = jax.nn.gelu(h, approximate=True)
    y = jnp.dot(h.astype(jnp.bfloat16), w2_ref[...],
                preferred_element_type=jnp.float32) + b2_ref[...]
    o_ref[...] = (x + y).astype(o_ref.dtype)                  # fused residual


def _conv3x3_res_kernel(xp_ref, w_ref, b_ref, res_ref, o_ref):
    # xp_ref: (1, H+2, W+2, Cin) zero-padded NHWC tile, w_ref: (3, 3, Cin, Cout) bf16.
    # TODO(synk): for very large images this should be row-tiled with manual halo DMA
    #             to keep per-step VMEM small (v7x 64 MiB); fine at these sizes.
    Hp2, Wp2, Cin = xp_ref.shape[1], xp_ref.shape[2], xp_ref.shape[3]
    H, W = Hp2 - 2, Wp2 - 2
    xp = xp_ref[0].astype(jnp.bfloat16)                       # (H+2, W+2, Cin)

    acc = None
    for dy in range(3):
        for dx in range(3):
            tap = xp[dy:dy + H, dx:dx + W, :].reshape(H * W, Cin)
            c = jnp.dot(tap, w_ref[dy, dx], preferred_element_type=jnp.float32)
            acc = c if acc is None else acc + c

    out = acc + b_ref[...] + res_ref[0].astype(jnp.float32)
    o_ref[0] = out.astype(o_ref.dtype)


# --------------------------------------------------------------------------------------
# Pallas call wrappers
# --------------------------------------------------------------------------------------

def window_attention_block(xw, p, num_heads, scale, nW, shift):
    """xw: (B*nW, N, C) rolled+partitioned tokens (carries the shortcut). Returns same shape."""
    NW, N, C = xw.shape
    hd = C // num_heads
    w_blk = _pick_window_block(nW, NW)
    grid = (NW // w_blk,)

    common_specs = [
        pl.BlockSpec((1, C), lambda i: (0, 0)),                      # ln1 gamma
        pl.BlockSpec((1, C), lambda i: (0, 0)),                      # ln1 beta
        pl.BlockSpec((C, 3 * C), lambda i: (0, 0)),                  # qkv_w (bf16)
        pl.BlockSpec((1, 3 * C), lambda i: (0, 0)),                  # qkv_b
        pl.BlockSpec((num_heads, hd, C), lambda i: (0, 0, 0)),       # proj_w per head (bf16)
        pl.BlockSpec((1, C), lambda i: (0, 0)),                      # proj_b
        pl.BlockSpec((num_heads, N, N), lambda i: (0, 0, 0)),        # rel-pos bias
    ]

    if shift > 0:
        nwb = nW // w_blk
        kernel = functools.partial(_win_attn_kernel, num_heads=num_heads,
                                   scale=scale, has_mask=True)
        in_specs = ([pl.BlockSpec((w_blk, N, C), lambda i: (i, 0, 0)),
                     pl.BlockSpec((w_blk, N, N), lambda i: (i % nwb, 0, 0))]
                    + common_specs)
        args = (xw, p["attn_mask"], p["ln1_g"], p["ln1_b"], p["qkv_w"], p["qkv_b"],
                p["proj_w"], p["proj_b"], p["rel_bias"])
    else:
        kernel = functools.partial(_win_attn_kernel, num_heads=num_heads,
                                   scale=scale, has_mask=False)
        in_specs = ([pl.BlockSpec((w_blk, N, C), lambda i: (i, 0, 0))]
                    + common_specs)
        args = (xw, p["ln1_g"], p["ln1_b"], p["qkv_w"], p["qkv_b"],
                p["proj_w"], p["proj_b"], p["rel_bias"])

    return pl.pallas_call(
        kernel,
        grid=grid,
        in_specs=in_specs,
        out_specs=pl.BlockSpec((w_blk, N, C), lambda i: (i, 0, 0)),
        out_shape=jax.ShapeDtypeStruct((NW, N, C), xw.dtype),
        compiler_params=pltpu.CompilerParams(dimension_semantics=("parallel",)),
    )(*args)


def mlp_block(x, p):
    """Fused LN2 + MLP + residual, tiled over token rows."""
    B, L, C = x.shape
    total = B * L
    R = _pick_row_block(total)
    Hd = p["fc1_w"].shape[1]
    xf = x.reshape(total, C)
    y = pl.pallas_call(
        _mlp_kernel,
        grid=(total // R,),
        in_specs=[
            pl.BlockSpec((R, C), lambda i: (i, 0)),
            pl.BlockSpec((1, C), lambda i: (0, 0)),
            pl.BlockSpec((1, C), lambda i: (0, 0)),
            pl.BlockSpec((C, Hd), lambda i: (0, 0)),
            pl.BlockSpec((1, Hd), lambda i: (0, 0)),
            pl.BlockSpec((Hd, C), lambda i: (0, 0)),
            pl.BlockSpec((1, C), lambda i: (0, 0)),
        ],
        out_specs=pl.BlockSpec((R, C), lambda i: (i, 0)),
        out_shape=jax.ShapeDtypeStruct((total, C), x.dtype),
        compiler_params=pltpu.CompilerParams(dimension_semantics=("parallel",)),
    )(xf, p["ln2_g"], p["ln2_b"], p["fc1_w"], p["fc1_b"], p["fc2_w"], p["fc2_b"])
    return y.reshape(B, L, C)


def conv3x3_residual(x_img, w, b, res):
    # x_img: (B, H, W, C) NHWC; w: (3, 3, Cin, Cout) bf16; b: (1, Cout); res: (B, L, C)
    B, H, W, C = x_img.shape
    L = H * W
    xp = jnp.pad(x_img, ((0, 0), (1, 1), (1, 1), (0, 0)))
    return pl.pallas_call(
        _conv3x3_res_kernel,
        grid=(B,),
        in_specs=[
            pl.BlockSpec((1, H + 2, W + 2, C), lambda i: (i, 0, 0, 0)),
            pl.BlockSpec((3, 3, C, C), lambda i: (0, 0, 0, 0)),
            pl.BlockSpec((1, C), lambda i: (0, 0)),
            pl.BlockSpec((1, L, C), lambda i: (i, 0, 0)),
        ],
        out_specs=pl.BlockSpec((1, L, C), lambda i: (i, 0, 0)),
        out_shape=jax.ShapeDtypeStruct((B, L, C), res.dtype),
        compiler_params=pltpu.CompilerParams(dimension_semantics=("parallel",)),
    )(xp, w, b, res)


# --------------------------------------------------------------------------------------
# Swin helpers (layout / masks / relative-position bias — plain JAX / numpy glue)
# --------------------------------------------------------------------------------------

def _rel_pos_index_np(ws):
    coords = np.stack(np.meshgrid(np.arange(ws), np.arange(ws), indexing="ij"))
    coords_flat = coords.reshape(2, -1)
    rel = coords_flat[:, :, None] - coords_flat[:, None, :]
    rel = rel.transpose(1, 2, 0).astype(np.int64)
    rel[:, :, 0] += ws - 1
    rel[:, :, 1] += ws - 1
    rel[:, :, 0] *= 2 * ws - 1
    return rel.sum(-1)                                              # (N, N)


def _attn_mask_np(H, W, ws, shift):
    img_mask = np.zeros((1, H, W, 1), np.float32)
    slices = (slice(0, -ws), slice(-ws, -shift), slice(-shift, None))
    cnt = 0
    for hs in slices:
        for wsl in slices:
            img_mask[:, hs, wsl, :] = cnt
            cnt += 1
    nWh, nWw = H // ws, W // ws
    mw = img_mask.reshape(1, nWh, ws, nWw, ws, 1).transpose(0, 1, 3, 2, 4, 5)
    mw = mw.reshape(-1, ws * ws)
    attn_mask = mw[:, None, :] - mw[:, :, None]
    return np.where(attn_mask != 0, -100.0, 0.0).astype(np.float32)  # (nW, N, N)


def window_partition(x, ws):
    B, H, W, C = x.shape
    nWh, nWw = H // ws, W // ws
    x = x.reshape(B, nWh, ws, nWw, ws, C).transpose(0, 1, 3, 2, 4, 5)
    return x.reshape(B * nWh * nWw, ws * ws, C)


def window_reverse(xw, ws, H, W, B, C):
    nWh, nWw = H // ws, W // ws
    x = xw.reshape(B, nWh, nWw, ws, ws, C).transpose(0, 1, 3, 2, 4, 5)
    return x.reshape(B, H, W, C)


# --------------------------------------------------------------------------------------
# RSTB forward
# --------------------------------------------------------------------------------------

def swin_block(p, x, H, W, ws, shift, num_heads):
    B, L, C = x.shape
    nW = (H // ws) * (W // ws)
    scale = (C // num_heads) ** -0.5

    # Roll + window partition (pure permutations); LN1, attention and the shortcut
    # add are all fused into the attention kernel (LN commutes with the permutation).
    h = x.reshape(B, H, W, C)
    if shift > 0:
        h = jnp.roll(h, shift=(-shift, -shift), axis=(1, 2))
    xw = window_partition(h, ws)                                  # (B*nW, N, C)

    aw = window_attention_block(xw, p, num_heads, scale, nW, shift)

    h = window_reverse(aw, ws, H, W, B, C)
    if shift > 0:
        h = jnp.roll(h, shift=(shift, shift), axis=(1, 2))
    x = h.reshape(B, L, C)

    # LN2 + MLP + residual fused.
    return mlp_block(x, p)


def rstb_forward(params, x, x_size, *, window_size, num_heads):
    H, W = x_size
    B, L, C = x.shape
    res = x
    h = x
    # residual_group (BasicLayer): depth shifted-window Swin blocks
    for i, blk in enumerate(params["blocks"]):
        shift = 0 if i % 2 == 0 else window_size // 2
        h = swin_block(blk, h, H, W, window_size, shift, num_heads)
    # patch_unembed -> conv3x3 -> patch_embed -> + x  (fused conv + residual kernel)
    h_img = h.reshape(B, H, W, C)
    return conv3x3_residual(h_img, params["conv_w"], params["conv_b"], res)


# --------------------------------------------------------------------------------------
# Deterministic parameter init (synthetic, no checkpoint)
# --------------------------------------------------------------------------------------

def init_params(key, dim, depth, num_heads, window_size, mlp_ratio, H, W):
    N = window_size * window_size
    hd = dim // num_heads
    hidden = int(dim * mlp_ratio)
    rel_idx = _rel_pos_index_np(window_size)
    attn_mask = jnp.asarray(_attn_mask_np(H, W, window_size, window_size // 2))

    def nrm(k, shape, std=0.02):
        return (std * jax.random.normal(k, shape)).astype(jnp.float32)

    blocks = []
    keys = jax.random.split(key, depth + 1)
    for d in range(depth):
        kt, kq, kp_, k1, k2 = jax.random.split(keys[d], 5)
        table = nrm(kt, ((2 * window_size - 1) ** 2, num_heads))
        rel_bias = table[rel_idx.reshape(-1)].reshape(N, N, num_heads).transpose(2, 0, 1)
        proj_w = nrm(kp_, (dim, dim)).reshape(num_heads, hd, dim)     # per-head rows
        blocks.append(dict(
            ln1_g=jnp.ones((1, dim), jnp.float32), ln1_b=jnp.zeros((1, dim), jnp.float32),
            qkv_w=nrm(kq, (dim, 3 * dim)).astype(jnp.bfloat16),
            qkv_b=jnp.zeros((1, 3 * dim), jnp.float32),
            proj_w=proj_w.astype(jnp.bfloat16),
            proj_b=jnp.zeros((1, dim), jnp.float32),
            ln2_g=jnp.ones((1, dim), jnp.float32), ln2_b=jnp.zeros((1, dim), jnp.float32),
            fc1_w=nrm(k1, (dim, hidden)).astype(jnp.bfloat16),
            fc1_b=jnp.zeros((1, hidden), jnp.float32),
            fc2_w=nrm(k2, (hidden, dim)).astype(jnp.bfloat16),
            fc2_b=jnp.zeros((1, dim), jnp.float32),
            rel_bias=rel_bias.astype(jnp.float32),
            attn_mask=attn_mask,
        ))
    conv_w = nrm(keys[depth], (3, 3, dim, dim)).astype(jnp.bfloat16)
    conv_b = jnp.zeros((1, dim), jnp.float32)
    return dict(blocks=blocks, conv_w=conv_w, conv_b=conv_b)


# --------------------------------------------------------------------------------------

if __name__ == "__main__":
    B, C, H, W = 2, 8, 8, 8
    depth, num_heads, window_size, mlp_ratio = 2, 2, 4, 2.0

    key = jax.random.PRNGKey(0)
    kx, kp = jax.random.split(key)
    x = jax.random.normal(kx, (B, H * W, C), jnp.float32)     # (B, L, C) token layout
    params = init_params(kp, C, depth, num_heads, window_size, mlp_ratio, H, W)

    y = rstb_forward(params, x, (H, W), window_size=window_size, num_heads=num_heads)
    y = jax.block_until_ready(y)

    assert y.shape == (B, H * W, C), y.shape
    assert y.dtype == jnp.float32
    assert bool(jnp.all(jnp.isfinite(y)))
    print("KERNEL_OK")
</pallas_src>

<mosaic_0001>
module attributes {stable_mosaic.version = 11 : i64} {
  func.func @_win_attn_kernel(%arg0: i32, %arg1: memref<4x16x8xf32, #tpu.memory_space<vmem>>, %arg2: memref<1x8xf32, #tpu.memory_space<vmem>>, %arg3: memref<1x8xf32, #tpu.memory_space<vmem>>, %arg4: memref<8x24xbf16, #tpu.memory_space<vmem>>, %arg5: memref<1x24xf32, #tpu.memory_space<vmem>>, %arg6: memref<2x4x8xbf16, #tpu.memory_space<vmem>>, %arg7: memref<1x8xf32, #tpu.memory_space<vmem>>, %arg8: memref<2x16x16xf32, #tpu.memory_space<vmem>>, %arg9: memref<4x16x8xf32, #tpu.memory_space<vmem>>) attributes {dimension_semantics = [#tpu.dimension_semantics<parallel>], iteration_bounds = array<i64: 2>, scalar_prefetch = 0 : i64, scratch_operands = 0 : i64, tpu.core_type = #tpu.core_type<tc>, window_params = [{transform_indices = @transform_0, window_bounds = array<i64: 4, 16, 8>}, {pipeline_mode = #tpu.pipeline_mode<synchronous>, transform_indices = @transform_1, window_bounds = array<i64: 1, 8>}, {pipeline_mode = #tpu.pipeline_mode<synchronous>, transform_indices = @transform_2, window_bounds = array<i64: 1, 8>}, {pipeline_mode = #tpu.pipeline_mode<synchronous>, transform_indices = @transform_3, window_bounds = array<i64: 8, 24>}, {pipeline_mode = #tpu.pipeline_mode<synchronous>, transform_indices = @transform_4, window_bounds = array<i64: 1, 24>}, {pipeline_mode = #tpu.pipeline_mode<synchronous>, transform_indices = @transform_5, window_bounds = array<i64: 2, 4, 8>}, {pipeline_mode = #tpu.pipeline_mode<synchronous>, transform_indices = @transform_6, window_bounds = array<i64: 1, 8>}, {pipeline_mode = #tpu.pipeline_mode<synchronous>, transform_indices = @transform_7, window_bounds = array<i64: 2, 16, 16>}, {transform_indices = @transform_8, window_bounds = array<i64: 4, 16, 8>}]} {
    %c0 = arith.constant 0 : index
    %c0_0 = arith.constant 0 : index
    %c0_1 = arith.constant 0 : index
    %0 = vector.load %arg1[%c0, %c0_0, %c0_1] : memref<4x16x8xf32, #tpu.memory_space<vmem>>, vector<4x16x8xf32>
    %cst = arith.constant dense<0.000000e+00> : vector<4x16xf32>
    %1 = vector.multi_reduction <add>, %0, %cst [2] : vector<4x16x8xf32> to vector<4x16xf32>
    %2 = vector.shape_cast %1 : vector<4x16xf32> to vector<4x16x1xf32>
    %cst_2 = arith.constant 8.000000e+00 : f32
    %3 = vector.broadcast %cst_2 : f32 to vector<4x16x1xf32>
    %4 = arith.divf %2, %3 : vector<4x16x1xf32>
    %5 = vector.broadcast %4 : vector<4x16x1xf32> to vector<4x16x8xf32>
    %6 = arith.subf %0, %5 : vector<4x16x8xf32>
    %7 = arith.mulf %6, %6 : vector<4x16x8xf32>
    %cst_3 = arith.constant dense<0.000000e+00> : vector<4x16xf32>
    %8 = vector.multi_reduction <add>, %7, %cst_3 [2] : vector<4x16x8xf32> to vector<4x16xf32>
    %9 = vector.shape_cast %8 : vector<4x16xf32> to vector<4x16x1xf32>
    %cst_4 = arith.constant 8.000000e+00 : f32
    %10 = vector.broadcast %cst_4 : f32 to vector<4x16x1xf32>
    %11 = arith.divf %9, %10 : vector<4x16x1xf32>
    %12 = vector.broadcast %4 : vector<4x16x1xf32> to vector<4x16x8xf32>
    %13 = arith.subf %0, %12 : vector<4x16x8xf32>
    %cst_5 = arith.constant 9.99999974E-6 : f32
    %14 = vector.broadcast %cst_5 : f32 to vector<4x16x1xf32>
    %15 = arith.addf %11, %14 : vector<4x16x1xf32>
    %16 = math.rsqrt %15 : vector<4x16x1xf32>
    %17 = vector.broadcast %16 : vector<4x16x1xf32> to vector<4x16x8xf32>
    %18 = arith.mulf %13, %17 : vector<4x16x8xf32>
    %c0_6 = arith.constant 0 : index
    %c0_7 = arith.constant 0 : index
    %19 = vector.load %arg2[%c0_6, %c0_7] : memref<1x8xf32, #tpu.memory_space<vmem>>, vector<1x8xf32>
    %20 = vector.shape_cast %19 : vector<1x8xf32> to vector<1x1x8xf32>
    %21 = vector.broadcast %20 : vector<1x1x8xf32> to vector<4x16x8xf32>
    %22 = arith.mulf %18, %21 : vector<4x16x8xf32>
    %c0_8 = arith.constant 0 : index
    %c0_9 = arith.constant 0 : index
    %23 = vector.load %arg3[%c0_8, %c0_9] : memref<1x8xf32, #tpu.memory_space<vmem>>, vector<1x8xf32>
    %24 = vector.shape_cast %23 : vector<1x8xf32> to vector<1x1x8xf32>
    %25 = vector.broadcast %24 : vector<1x1x8xf32> to vector<4x16x8xf32>
    %26 = arith.addf %22, %25 : vector<4x16x8xf32>
    %27 = arith.truncf %26 : vector<4x16x8xf32> to vector<4x16x8xbf16>
    %28 = vector.shape_cast %27 : vector<4x16x8xbf16> to vector<64x8xbf16>
    %c0_10 = arith.constant 0 : index
    %c0_11 = arith.constant 0 : index
    %29 = vector.load %arg4[%c0_10, %c0_11] : memref<8x24xbf16, #tpu.memory_space<vmem>>, vector<8x24xbf16>
    %cst_12 = arith.constant dense<0.000000e+00> : vector<64x24xf32>
    %30 = tpu.matmul %28, %29, %cst_12 {dimension_numbers = #tpu.dot_dimension_numbers<[1], [0], [0], [1], [0, 0, 1, 1], [], []>} : vector<64x8xbf16>, vector<8x24xbf16>, vector<64x24xf32> -> vector<64x24xf32>
    %c0_13 = arith.constant 0 : index
    %c0_14 = arith.constant 0 : index
    %31 = vector.load %arg5[%c0_13, %c0_14] : memref<1x24xf32, #tpu.memory_space<vmem>>, vector<1x24xf32>
    %32 = vector.broadcast %31 : vector<1x24xf32> to vector<64x24xf32>
    %33 = arith.addf %30, %32 : vector<64x24xf32>
    %34 = vector.shape_cast %33 : vector<64x24xf32> to vector<4x16x24xf32>
    %35 = vector.extract_strided_slice %34 {offsets = [0, 0, 0], sizes = [4, 16, 4], strides = [1, 1, 1]} : vector<4x16x24xf32> to vector<4x16x4xf32>
    %36 = arith.truncf %35 : vector<4x16x4xf32> to vector<4x16x4xbf16>
    %37 = vector.extract_strided_slice %34 {offsets = [0, 0, 8], sizes = [4, 16, 4], strides = [1, 1, 1]} : vector<4x16x24xf32> to vector<4x16x4xf32>
    %38 = arith.truncf %37 : vector<4x16x4xf32> to vector<4x16x4xbf16>
    %39 = vector.extract_strided_slice %34 {offsets = [0, 0, 16], sizes = [4, 16, 4], strides = [1, 1, 1]} : vector<4x16x24xf32> to vector<4x16x4xf32>
    %40 = arith.truncf %39 : vector<4x16x4xf32> to vector<4x16x4xbf16>
    "tpu.trace_start"() <{level = 10 : i32, message = "wnd,wmd->wnm"}> : () -> ()
    %cst_15 = arith.constant dense<0.000000e+00> : vector<4x16x16xf32>
    %41 = tpu.matmul %36, %38, %cst_15 {dimension_numbers = #tpu.dot_dimension_numbers<[2], [2], [1], [1], [0, 0, 0, 1, 1, 1], [0], [0]>} : vector<4x16x4xbf16>, vector<4x16x4xbf16>, vector<4x16x16xf32> -> vector<4x16x16xf32>
    "tpu.trace_stop"() : () -> ()
    %cst_16 = arith.constant 5.000000e-01 : f32
    %42 = vector.broadcast %cst_16 : f32 to vector<4x16x16xf32>
    %43 = arith.mulf %41, %42 : vector<4x16x16xf32>
    %c0_17 = arith.constant 0 : index
    %c0_18 = arith.constant 0 : index
    %c0_19 = arith.constant 0 : index
    %44 = vector.load %arg8[%c0_17, %c0_18, %c0_19] : memref<2x16x16xf32, #tpu.memory_space<vmem>>, vector<1x16x16xf32>
    %45 = vector.shape_cast %44 : vector<1x16x16xf32> to vector<16x16xf32>
    %46 = vector.shape_cast %45 : vector<16x16xf32> to vector<1x16x16xf32>
    %47 = vector.broadcast %46 : vector<1x16x16xf32> to vector<4x16x16xf32>
    %48 = arith.addf %43, %47 : vector<4x16x16xf32>
    %cst_20 = arith.constant dense<0xFF800000> : vector<4x16xf32>
    %49 = vector.multi_reduction <maximumf>, %48, %cst_20 [2] : vector<4x16x16xf32> to vector<4x16xf32>
    %50 = vector.shape_cast %49 : vector<4x16xf32> to vector<4x16x1xf32>
    %51 = vector.broadcast %50 : vector<4x16x1xf32> to vector<4x16x16xf32>
    %52 = arith.subf %48, %51 : vector<4x16x16xf32>
    %53 = math.exp %52 : vector<4x16x16xf32>
    %cst_21 = arith.constant dense<0.000000e+00> : vector<4x16xf32>
    %54 = vector.multi_reduction <add>, %53, %cst_21 [2] : vector<4x16x16xf32> to vector<4x16xf32>
    %55 = vector.shape_cast %54 : vector<4x16xf32> to vector<4x16x1xf32>
    %56 = tpu.reciprocal %55 {approx = true} : vector<4x16x1xf32> -> vector<4x16x1xf32>
    %57 = vector.broadcast %56 : vector<4x16x1xf32> to vector<4x16x16xf32>
    %58 = arith.mulf %53, %57 : vector<4x16x16xf32>
    %59 = arith.truncf %58 : vector<4x16x16xf32> to vector<4x16x16xbf16>
    "tpu.trace_start"() <{level = 10 : i32, message = "wnm,wmd->wnd"}> : () -> ()
    %cst_22 = arith.constant dense<0.000000e+00> : vector<4x16x4xf32>
    %60 = tpu.matmul %59, %40, %cst_22 {dimension_numbers = #tpu.dot_dimension_numbers<[2], [1], [1], [2], [0, 0, 0, 1, 1, 2], [0], [0]>} : vector<4x16x16xbf16>, vector<4x16x4xbf16>, vector<4x16x4xf32> -> vector<4x16x4xf32>
    "tpu.trace_stop"() : () -> ()
    %61 = arith.truncf %60 : vector<4x16x4xf32> to vector<4x16x4xbf16>
    %62 = vector.shape_cast %61 : vector<4x16x4xbf16> to vector<64x4xbf16>
    %c0_23 = arith.constant 0 : index
    %c0_24 = arith.constant 0 : index
    %c0_25 = arith.constant 0 : index
    %63 = vector.load %arg6[%c0_23, %c0_24, %c0_25] : memref<2x4x8xbf16, #tpu.memory_space<vmem>>, vector<1x4x8xbf16>
    %64 = vector.shape_cast %63 : vector<1x4x8xbf16> to vector<4x8xbf16>
    %cst_26 = arith.constant dense<0.000000e+00> : vector<64x8xf32>
    %65 = tpu.matmul %62, %64, %cst_26 {dimension_numbers = #tpu.dot_dimension_numbers<[1], [0], [0], [1], [0, 0, 1, 1], [], []>} : vector<64x4xbf16>, vector<4x8xbf16>, vector<64x8xf32> -> vector<64x8xf32>
    %66 = vector.extract_strided_slice %34 {offsets = [0, 0, 4], sizes = [4, 16, 4], strides = [1, 1, 1]} : vector<4x16x24xf32> to vector<4x16x4xf32>
    %67 = arith.truncf %66 : vector<4x16x4xf32> to vector<4x16x4xbf16>
    %68 = vector.extract_strided_slice %34 {offsets = [0, 0, 12], sizes = [4, 16, 4], strides = [1, 1, 1]} : vector<4x16x24xf32> to vector<4x16x4xf32>
    %69 = arith.truncf %68 : vector<4x16x4xf32> to vector<4x16x4xbf16>
    %70 = vector.extract_strided_slice %34 {offsets = [0, 0, 20], sizes = [4, 16, 4], strides = [1, 1, 1]} : vector<4x16x24xf32> to vector<4x16x4xf32>
    %71 = arith.truncf %70 : vector<4x16x4xf32> to vector<4x16x4xbf16>
    "tpu.trace_start"() <{level = 10 : i32, message = "wnd,wmd->wnm"}> : () -> ()
    %cst_27 = arith.constant dense<0.000000e+00> : vector<4x16x16xf32>
    %72 = tpu.matmul %67, %69, %cst_27 {dimension_numbers = #tpu.dot_dimension_numbers<[2], [2], [1], [1], [0, 0, 0, 1, 1, 1], [0], [0]>} : vector<4x16x4xbf16>, vector<4x16x4xbf16>, vector<4x16x16xf32> -> vector<4x16x16xf32>
    "tpu.trace_stop"() : () -> ()
    %cst_28 = arith.constant 5.000000e-01 : f32
    %73 = vector.broadcast %cst_28 : f32 to vector<4x16x16xf32>
    %74 = arith.mulf %72, %73 : vector<4x16x16xf32>
    %c1 = arith.constant 1 : index
    %c0_29 = arith.constant 0 : index
    %c0_30 = arith.constant 0 : index
    %75 = vector.load %arg8[%c1, %c0_29, %c0_30] : memref<2x16x16xf32, #tpu.memory_space<vmem>>, vector<1x16x16xf32>
    %76 = vector.shape_cast %75 : vector<1x16x16xf32> to vector<16x16xf32>
    %77 = vector.shape_cast %76 : vector<16x16xf32> to vector<1x16x16xf32>
    %78 = vector.broadcast %77 : vector<1x16x16xf32> to vector<4x16x16xf32>
    %79 = arith.addf %74, %78 : vector<4x16x16xf32>
    %cst_31 = arith.constant dense<0xFF800000> : vector<4x16xf32>
    %80 = vector.multi_reduction <maximumf>, %79, %cst_31 [2] : vector<4x16x16xf32> to vector<4x16xf32>
    %81 = vector.shape_cast %80 : vector<4x16xf32> to vector<4x16x1xf32>
    %82 = vector.broadcast %81 : vector<4x16x1xf32> to vector<4x16x16xf32>
    %83 = arith.subf %79, %82 : vector<4x16x16xf32>
    %84 = math.exp %83 : vector<4x16x16xf32>
    %cst_32 = arith.constant dense<0.000000e+00> : vector<4x16xf32>
    %85 = vector.multi_reduction <add>, %84, %cst_32 [2] : vector<4x16x16xf32> to vector<4x16xf32>
    %86 = vector.shape_cast %85 : vector<4x16xf32> to vector<4x16x1xf32>
    %87 = tpu.reciprocal %86 {approx = true} : vector<4x16x1xf32> -> vector<4x16x1xf32>
    %88 = vector.broadcast %87 : vector<4x16x1xf32> to vector<4x16x16xf32>
    %89 = arith.mulf %84, %88 : vector<4x16x16xf32>
    %90 = arith.truncf %89 : vector<4x16x16xf32> to vector<4x16x16xbf16>
    "tpu.trace_start"() <{level = 10 : i32, message = "wnm,wmd->wnd"}> : () -> ()
    %cst_33 = arith.constant dense<0.000000e+00> : vector<4x16x4xf32>
    %91 = tpu.matmul %90, %71, %cst_33 {dimension_numbers = #tpu.dot_dimension_numbers<[2], [1], [1], [2], [0, 0, 0, 1, 1, 2], [0], [0]>} : vector<4x16x16xbf16>, vector<4x16x4xbf16>, vector<4x16x4xf32> -> vector<4x16x4xf32>
    "tpu.trace_stop"() : () -> ()
    %92 = arith.truncf %91 : vector<4x16x4xf32> to vector<4x16x4xbf16>
    %93 = vector.shape_cast %92 : vector<4x16x4xbf16> to vector<64x4xbf16>
    %c1_34 = arith.constant 1 : index
    %c0_35 = arith.constant 0 : index
    %c0_36 = arith.constant 0 : index
    %94 = vector.load %arg6[%c1_34, %c0_35, %c0_36] : memref<2x4x8xbf16, #tpu.memory_space<vmem>>, vector<1x4x8xbf16>
    %95 = vector.shape_cast %94 : vector<1x4x8xbf16> to vector<4x8xbf16>
    %cst_37 = arith.constant dense<0.000000e+00> : vector<64x8xf32>
    %96 = tpu.matmul %93, %95, %cst_37 {dimension_numbers = #tpu.dot_dimension_numbers<[1], [0], [0], [1], [0, 0, 1, 1], [], []>} : vector<64x4xbf16>, vector<4x8xbf16>, vector<64x8xf32> -> vector<64x8xf32>
    %97 = arith.addf %65, %96 : vector<64x8xf32>
    %c0_38 = arith.constant 0 : index
    %c0_39 = arith.constant 0 : index
    %98 = vector.load %arg7[%c0_38, %c0_39] : memref<1x8xf32, #tpu.memory_space<vmem>>, vector<1x8xf32>
    %99 = vector.broadcast %98 : vector<1x8xf32> to vector<64x8xf32>
    %100 = arith.addf %97, %99 : vector<64x8xf32>
    %101 = vector.shape_cast %100 : vector<64x8xf32> to vector<4x16x8xf32>
    %102 = arith.addf %0, %101 : vector<4x16x8xf32>
    %c0_40 = arith.constant 0 : index
    %c0_41 = arith.constant 0 : index
    %c0_42 = arith.constant 0 : index
    %103 = vector.load %arg9[%c0_40, %c0_41, %c0_42] : memref<4x16x8xf32, #tpu.memory_space<vmem>>, vector<4x16x8xf32>
    tpu.vector_store %arg9[%c0_40, %c0_41, %c0_42], %102 {strides = array<i32>} : memref<4x16x8xf32, #tpu.memory_space<vmem>>, vector<4x16x8xf32>,
    return
  }
  func.func @transform_0(%arg0: i32) -> (i32, i32, i32) {
    %c0_i32 = arith.constant 0 : i32
    %c0_i32_0 = arith.constant 0 : i32
    %c0_i32_1 = arith.constant 0 : i32
    return %arg0, %c0_i32, %c0_i32_0 : i32, i32, i32
  }
  func.func @transform_1(%arg0: i32) -> (i32, i32) {
    %c0_i32 = arith.constant 0 : i32
    %c0_i32_0 = arith.constant 0 : i32
    %c0_i32_1 = arith.constant 0 : i32
    return %c0_i32, %c0_i32_0 : i32, i32
  }
  func.func @transform_2(%arg0: i32) -> (i32, i32) {
    %c0_i32 = arith.constant 0 : i32
    %c0_i32_0 = arith.constant 0 : i32
    %c0_i32_1 = arith.constant 0 : i32
    return %c0_i32, %c0_i32_0 : i32, i32
  }
  func.func @transform_3(%arg0: i32) -> (i32, i32) {
    %c0_i32 = arith.constant 0 : i32
    %c0_i32_0 = arith.constant 0 : i32
    %c0_i32_1 = arith.constant 0 : i32
    return %c0_i32, %c0_i32_0 : i32, i32
  }
  func.func @transform_4(%arg0: i32) -> (i32, i32) {
    %c0_i32 = arith.constant 0 : i32
    %c0_i32_0 = arith.constant 0 : i32
    %c0_i32_1 = arith.constant 0 : i32
    return %c0_i32, %c0_i32_0 : i32, i32
  }
  func.func @transform_5(%arg0: i32) -> (i32, i32, i32) {
    %c0_i32 = arith.constant 0 : i32
    %c0_i32_0 = arith.constant 0 : i32
    %c0_i32_1 = arith.constant 0 : i32
    %c0_i32_2 = arith.constant 0 : i32
    return %c0_i32, %c0_i32_0, %c0_i32_1 : i32, i32, i32
  }
  func.func @transform_6(%arg0: i32) -> (i32, i32) {
    %c0_i32 = arith.constant 0 : i32
    %c0_i32_0 = arith.constant 0 : i32
    %c0_i32_1 = arith.constant 0 : i32
    return %c0_i32, %c0_i32_0 : i32, i32
  }
  func.func @transform_7(%arg0: i32) -> (i32, i32, i32) {
    %c0_i32 = arith.constant 0 : i32
    %c0_i32_0 = arith.constant 0 : i32
    %c0_i32_1 = arith.constant 0 : i32
    %c0_i32_2 = arith.constant 0 : i32
    return %c0_i32, %c0_i32_0, %c0_i32_1 : i32, i32, i32
  }
  func.func @transform_8(%arg0: i32) -> (i32, i32, i32) {
    %c0_i32 = arith.constant 0 : i32
    %c0_i32_0 = arith.constant 0 : i32
    %c0_i32_1 = arith.constant 0 : i32
    return %arg0, %c0_i32, %c0_i32_0 : i32, i32, i32
  }
}

</mosaic_0001>

<bundles_post_ra>
// kernel: tpu_custom_call.1
= control target key start
LH: loop header
LB: loop body
LE: loop exit
PB: predicated region body
PF: predicated region fallthrough
CT: control target
= control target key end

     0   :  { %s2217_s27 = smov 0   ;;  %s2578_s0 = inlined_call_operand.vmem [shape: f32[8,16,8], index: 0, kind: input, shape index: {}]   ;;  %s2579_s1 = inlined_call_operand.vmem [shape: f32[1,8], index: 1, kind: input, shape index: {}]   ;;  %s2580_s2 = inlined_call_operand.vmem [shape: f32[1,8], index: 2, kind: input, shape index: {}]   ;;  %s2581_s3 = inlined_call_operand.vmem [shape: bf16[8,24], index: 3, kind: input, shape index: {}]   ;;  %s2582_s4 = inlined_call_operand.vmem [shape: f32[1,24], index: 4, kind: input, shape index: {}]   ;;  %s2583_s5 = inlined_call_operand.vmem [shape: bf16[2,4,8], index: 5, kind: input, shape index: {}]   ;;  %s2584_s6 = inlined_call_operand.vmem [shape: f32[1,8], index: 6, kind: input, shape index: {}]   ;;  %s2585_s7 = inlined_call_operand.vmem [shape: f32[2,16,16], index: 7, kind: input, shape index: {}]   ;;  %s2586_s8 = inlined_call_operand.vmem [shape: f32[8,16,8], index: 8, kind: output, shape index: {}]  }
   0x1 LB: > { %s1820_s28 = sadd.s32 4294967295, %s2163_s27   ;;  %p1824_p0 = scmp.ge.s32.totalorder %s2163_s27, 1  ;;  %s2163_s27 = sphi %s2217_s27, %s18_s27  }
   0x2   : > { %p264_p1 = scmp.lt.s32.totalorder %s2163_s27, 3 }
   0x4   : > { %p265_p2 = pnand %p1824_p0, %p264_p1 }
   0x5   : > { %s1825_s29 = sshll.u32 (!%p265_p2), %s1820_s28, 2  ;;  %vm323_vm0 = vcmask (!%p265_p2), 64512   ;;  %v463_v56 = vld [vmem:[%s2581_s3] sm:$0xf] (!%p265_p2)  ;;  %vm483_vm1 = vcmask (!%p265_p2), 1043456   ;;  %vm2166_vm2 = vmmov (!%p265_p2), 0  }
   0x6   : > { %268 = sbr.rel (%p265_p2) target bundleno = 2340 (0x924), region = 52  ;;  %p301_p3 = scmp.lt.s32.totalorder (!%p265_p2), %s1825_s29, 7  ;;  %2051 = vmatprep.subr.msk.bf16.mxu1 (!%p265_p2), %vm483_vm1, %v463_v56  ;;  %v485_v57 = vsel (!%p265_p2), %vm483_vm1, %v463_v56, 0  ;;  %vm559_vm3 = vcmask (!%p265_p2), 31744   ;;  %vm775_vm4 = vcmask (!%p265_p2), 130048   ;;  %vm1582_vm5 = vcmask (!%p265_p2), 1041408  }
   0x7   : > { %1918 = vmatpush3.bf16.msra.mxu1 (!%p265_p2), %v485_v57  ;;  %s2167_s20 = smov (!%p265_p2), 120   ;;  %s2168_s25 = smov (!%p265_p2), 112  }
   0x8   : > { %s2169_s26 = smov (!%p265_p2), 116   ;;  %s2170_s28 = smov (!%p265_p2), 124  }
   0x9   : > { %s2171_s14 = smov (!%p265_p2), 108  }
   0xd   : > { %s2588_s29 = smov (!%p301_p3, %s1825_s29), 7 }
   0xe   : > { %s1868_s30 = sshll.u32 %s2588_s29, 4 }
   0xf   : > { %s2233_s11 = scalar_lea.vmem %s2578_s0, %s1868_s30  ;;  %s2549_s23 = scalar_lea.vmem %s2586_s8, %s1868_s30 }
  0x10   : > { %v315_v0 = vld [vmem:[%s2233_s11] sm:$0xff]  ;;  %v317_v1 = vld [vmem:[%s2233_s11 + $0x10] sm:$0xff]  ;;  %v316_v2 = vld [vmem:[%s2233_s11 + $0x8] sm:$0xff] }
  0x11   : > { %v324_v3 = vsel %vm323_vm0, %v315_v0, 0.0  ;;  %v330_v4 = vsel %vm323_vm0, %v317_v1, 0.0  ;;  %v318_v5 = vld [vmem:[%s2233_s11 + $0x18] sm:$0xff]  ;;  %v327_v6 = vsel %vm323_vm0, %v316_v2, 0.0  ;;  %v319_v8 = vld [vmem:[%s2233_s11 + $0x20] sm:$0xff]  ;;  %v320_v9 = vld [vmem:[%s2233_s11 + $0x28] sm:$0xff] }
  0x12   : > { %325 = vadd.xlane.f32.xlu0 %v324_v3  ;;  %331 = vadd.xlane.f32.xlu1 %v330_v4  ;;  %v333_v7 = vsel %vm323_vm0, %v318_v5, 0.0  ;;  %v336_v10 = vsel %vm323_vm0, %v319_v8, 0.0  ;;  %v339_v11 = vsel %vm323_vm0, %v320_v9, 0.0  ;;  %v321_v12 = vld [vmem:[%s2233_s11 + $0x30] sm:$0xff]  ;;  %v322_v13 = vld [vmem:[%s2233_s11 + $0x38] sm:$0xff] }
  0x13   : > { %v342_v14 = vsel %vm323_vm0, %v321_v12, 0.0  ;;  %v345_v15 = vsel %vm323_vm0, %v322_v13, 0.0 }
  0x16   : > { %328 = vadd.xlane.f32.xlu0 %v327_v6  ;;  %334 = vadd.xlane.f32.xlu1 %v333_v7 }
  0x1a   : > { %337 = vadd.xlane.f32.xlu0 %v336_v10  ;;  %340 = vadd.xlane.f32.xlu1 %v339_v11 }
  0x1e   : > { %343 = vadd.xlane.f32.xlu0 %v342_v14  ;;  %346 = vadd.xlane.f32.xlu1 %v345_v15 }
  0x9f   : > { %v326_v16 = vpop.xlane.xlu0 %325  ;;  %v332_v17 = vpop.xlane.xlu1 %331 }
  0xa0   : > { %v349_v18 = vmul.f32 0.125, %v326_v16  ;;  %v351_v19 = vmul.f32 0.125, %v332_v17 }
  0xa2   : > { %v2251_v20 = vsub.f32 %v315_v0, %v349_v18  ;;  %v2253_v21 = vsub.f32 %v317_v1, %v351_v19  ;;  %v1831_v19 = vld [vmem:[%s2579_s1] ss:$0 sm:$0xff] }
  0xa3   : > { %v329_v22 = vpop.xlane.xlu0 %328  ;;  %v335_v23 = vpop.xlane.xlu1 %334 }
  0xa4   : > { %v350_v24 = vmul.f32 0.125, %v329_v22  ;;  %v352_v25 = vmul.f32 0.125, %v335_v23  ;;  %v365_v26 = vmul.f32 %v2251_v20, %v2251_v20  ;;  %v367_v27 = vmul.f32 %v2253_v21, %v2253_v21 }
  0xa6   : > { %v2259_v28 = vsub.f32 %v316_v2, %v350_v24  ;;  %v2261_v29 = vsub.f32 %v318_v5, %v352_v25  ;;  %v373_v30 = vsel %vm323_vm0, %v365_v26, 0.0  ;;  %v379_v33 = vsel %vm323_vm0, %v367_v27, 0.0 }
  0xa7   : > { %374 = vadd.xlane.f32.xlu0 %v373_v30  ;;  %v338_v31 = vpop.xlane.xlu0 %337  ;;  %v341_v32 = vpop.xlane.xlu1 %340 }
  0xa8   : > { %v353_v34 = vmul.f32 0.125, %v338_v31  ;;  %v354_v35 = vmul.f32 0.125, %v341_v32  ;;  %v366_v36 = vmul.f32 %v2259_v28, %v2259_v28  ;;  %v368_v37 = vmul.f32 %v2261_v29, %v2261_v29 }
  0xaa   : > { %v2269_v38 = vsub.f32 %v319_v8, %v353_v34  ;;  %v2271_v39 = vsub.f32 %v320_v9, %v354_v35  ;;  %v376_v40 = vsel %vm323_vm0, %v366_v36, 0.0  ;;  %v382_v43 = vsel %vm323_vm0, %v368_v37, 0.0 }
  0xab   : > { %380 = vadd.xlane.f32.xlu0 %v379_v33  ;;  %377 = vadd.xlane.f32.xlu1 %v376_v40  ;;  %v344_v41 = vpop.xlane.xlu0 %343  ;;  %v347_v42 = vpop.xlane.xlu1 %346 }
  0xac   : > { %v355_v44 = vmul.f32 0.125, %v344_v41  ;;  %v356_v45 = vmul.f32 0.125, %v347_v42  ;;  %v369_v46 = vmul.f32 %v2269_v38, %v2269_v38  ;;  %v370_v47 = vmul.f32 %v2271_v39, %v2271_v39 }
  0xae   : > { %v2279_v48 = vsub.f32 %v321_v12, %v355_v44  ;;  %v2281_v49 = vsub.f32 %v322_v13, %v356_v45  ;;  %v385_v50 = vsel %vm323_vm0, %v369_v46, 0.0  ;;  %v388_v51 = vsel %vm323_vm0, %v370_v47, 0.0 }
  0xaf   : > { %383 = vadd.xlane.f32.xlu1 %v382_v43  ;;  %386 = vadd.xlane.f32.xlu0 %v385_v50 }
  0xb0   : > { %v371_v52 = vmul.f32 %v2279_v48, %v2279_v48  ;;  %v372_v53 = vmul.f32 %v2281_v49, %v2281_v49 }
  0xb2   : > { %v391_v54 = vsel %vm323_vm0, %v371_v52, 0.0  ;;  %v394_v55 = vsel %vm323_vm0, %v372_v53, 0.0 }
  0xb3   : > { %389 = vadd.xlane.f32.xlu1 %v388_v51  ;;  %392 = vadd.xlane.f32.xlu0 %v391_v54 }
  0xb7   : > { %395 = vadd.xlane.f32.xlu1 %v394_v55 }
 0x134   : > { %v375_v58 = vpop.xlane.xlu0 %374 }
 0x135   : > { %v397_v59 = vmul.f32 0.125, %v375_v58  ;;  %v1833_v58 = vld [vmem:[%s2582_s4] ss:$0 sm:$0xff] }
 0x137   : > { %v405_v60 = vadd.f32 1e-05, %v397_v59 }
 0x138   : > { %v378_v61 = vpop.xlane.xlu1 %377  ;;  %v381_v62 = vpop.xlane.xlu0 %380 }
 0x139   : > { %2069 = vrsqrt.f32 %v405_v60  ;;  %v398_v63 = vmul.f32 0.125, %v378_v61  ;;  %v399_v0 = vmul.f32 0.125, %v381_v62 }
 0x13b   : > { %v406_v1 = vadd.f32 1e-05, %v398_v63  ;;  %v407_v2 = vadd.f32 1e-05, %v399_v0 }
 0x13c   : > { %v384_v3 = vpop.xlane.xlu1 %383  ;;  %v387_v4 = vpop.xlane.xlu0 %386 }
 0x13d   : > { %2071 = vrsqrt.f32 %v406_v1  ;;  %v400_v5 = vmul.f32 0.125, %v384_v3  ;;  %v401_v6 = vmul.f32 0.125, %v387_v4 }
 0x13e   : > { %2073 = vrsqrt.f32 %v407_v2 }
 0x13f   : > { %v408_v7 = vadd.f32 1e-05, %v400_v5  ;;  %v409_v8 = vadd.f32 1e-05, %v401_v6 }
 0x140   : > { %v390_v9 = vpop.xlane.xlu1 %389  ;;  %v393_v10 = vpop.xlane.xlu0 %392 }
 0x141   : > { %2075 = vrsqrt.f32 %v408_v7  ;;  %v402_v11 = vmul.f32 0.125, %v390_v9  ;;  %v403_v12 = vmul.f32 0.125, %v393_v10 }
 0x142   : > { %2077 = vrsqrt.f32 %v409_v8 }
 0x143   : > { %v2070_v13 = vpop.eup %2069  ;;  %v410_v14 = vadd.f32 1e-05, %v402_v11  ;;  %v411_v15 = vadd.f32 1e-05, %v403_v12 }
 0x144   : > { %v396_v16 = vpop.xlane.xlu1 %395  ;;  %v421_v17 = vmul.f32 %v2070_v13, %v2251_v20  ;;  %v1832_v20 = vld [vmem:[%s2580_s2] ss:$0 sm:$0xff] }
 0x145   : > { %2079 = vrsqrt.f32 %v410_v14  ;;  %v404_v18 = vmul.f32 0.125, %v396_v16 }
 0x146   : > { %2081 = vrsqrt.f32 %v411_v15  ;;  %v436_v26 = vmul.f32 %v1831_v19, %v421_v17 }
 0x147   : > { %v2072_v22 = vpop.eup %2071  ;;  %v412_v23 = vadd.f32 1e-05, %v404_v18 }
 0x148   : > { %v2074_v24 = vpop.eup %2073  ;;  %v422_v25 = vmul.f32 %v2072_v22, %v2259_v28  ;;  %v451_v34 = vadd.f32 %v1832_v20, %v436_v26 }
 0x149   : > { %v423_v27 = vmul.f32 %v2074_v24, %v2253_v21  ;;  %2083 = vrsqrt.f32 %v412_v23 }
 0x14a   : > { %v437_v30 = vmul.f32 %v1831_v19, %v422_v25  ;;  %v765_v25 = vld [vmem:[%s2585_s7] sm:$0xff] }
 0x14b   : > { %v2076_v31 = vpop.eup %2075  ;;  %v438_v36 = vmul.f32 %v1831_v19, %v423_v27 }
 0x14c   : > { %v2078_v32 = vpop.eup %2077  ;;  %v424_v33 = vmul.f32 %v2076_v31, %v2261_v29  ;;  %v452_v35 = vadd.f32 %v1832_v20, %v437_v30  ;;  %v766_v30 = vld [vmem:[%s2585_s7 + $0x8] sm:$0xff] }
 0x14d   : > { %v425_v37 = vmul.f32 %v2078_v32, %v2269_v38  ;;  %v453_v43 = vadd.f32 %v1832_v20, %v438_v36 }
 0x14e   : > { %v459_v40 = vpack.c.bf16 %v452_v35, %v451_v34  ;;  %v439_v28 = vmul.f32 %v1831_v19, %v424_v33 }
 0x14f   : > { %v2080_v41 = vpop.eup %2079  ;;  %v440_v45 = vmul.f32 %v1831_v19, %v425_v37 }
 0x150   : > { %v2082_v42 = vpop.eup %2081  ;;  %v426_v21 = vmul.f32 %v2080_v41, %v2271_v39  ;;  %1919 = vmatprep.mubr.msk.bf16.mxu1 %vm323_vm0, %v459_v40  ;;  %v454_v44 = vadd.f32 %v1832_v20, %v439_v28 }
 0x151   : > { %v427_v46 = vmul.f32 %v2082_v42, %v2279_v48  ;;  %v455_v38 = vadd.f32 %v1832_v20, %v440_v45  ;;  %v2165_v48 = vmov 0.0  }
 0x152   : > { %v460_v47 = vpack.c.bf16 %v454_v44, %v453_v43  ;;  %v441_v29 = vmul.f32 %v1831_v19, %v426_v21  ;;  %1927 = vmatprep.subr.bf16.mxu1 %v2165_v48  ;;  %1939 = vmatprep.subr.bf16.mxu0 %v2165_v48 }
 0x153   : > { %v2084_v50 = vpop.eup %2083  ;;  %v442_v53 = vmul.f32 %v1831_v19, %v427_v46  ;;  %1941 = vmatprep.mubr.msk.bf16.mxu0 %vm2166_vm2, %v2165_v48 }
 0x154   : > { %v428_v51 = vmul.f32 %v2084_v50, %v2281_v49  ;;  %1920 = vmatmul.mubr.msk.bf16.vlgmr.msra.gmra.mrb[0].mxu1 %vm323_vm0, %v460_v47  ;;  %v456_v52 = vadd.f32 %v1832_v20, %v441_v29 }
 0x155   : > { %v457_v39 = vadd.f32 %v1832_v20, %v442_v53 }
 0x156   : > { %v461_v54 = vpack.c.bf16 %v456_v52, %v455_v38  ;;  %v443_v55 = vmul.f32 %v1831_v19, %v428_v51 }
 0x158   : > { %1923 = vmatprep.mubr.msk.bf16.mxu1 %vm323_vm0, %v461_v54  ;;  %v458_v56 = vadd.f32 %v1832_v20, %v443_v55 }
 0x15a   : > { %v462_v57 = vpack.c.bf16 %v458_v56, %v457_v39 }
 0x15c   : > { %1924 = vmatmul.mubr.msk.bf16.gmra.mrb[4].mxu1 %vm323_vm0, %v462_v57 }
 0x15d   : > { %1929 = vmatprep.mubr.msk.bf16.mxu1 %vm2166_vm2, %v2165_v48 }
 0x227   : > { %v1921_v49 = vpop.f32.mrb[0].mxu1 }
 0x228   : > { %v521_v59 = vpop.f32.mrb[1].mxu1  ;;  %v530_v61 = vadd.f32 %v1921_v49, %v1833_v58 }
 0x229   : > { %v1922_v60 = vpop.f32.mrb[2].mxu1  ;;  %v522_v0 = vadd.f32 %v1833_v58, %v521_v59 }
 0x22a   : > { %v533_v62 = vadd.f32 %v1922_v60, %v1833_v58  ;;  %v524_v63 = vpop.f32.mrb[3].mxu1 }
 0x22b   : > { %v525_v1 = vadd.f32 %v1833_v58, %v524_v63 }
 0x22c   : > { %v2321_v2 = vpack.c.bf16 %v533_v62, %v530_v61 }
 0x22d   : > { %v2323_v3 = vpack.c.bf16 %v525_v1, %v522_v0 }
 0x22e   : > { %608 = vrot.lane.b32.xlu1 %v2321_v2, %s2167_s20 }
 0x22f   : > { %557 = vrot.lane.b32.xlu0 %v2323_v3, %s2167_s20  ;;  %v1925_v4 = vpop.f32.mrb[4].mxu1 }
 0x230   : > { %v537_v5 = vpop.f32.mrb[5].mxu1  ;;  %v546_v7 = vadd.f32 %v1925_v4, %v1833_v58 }
 0x231   : > { %v1926_v6 = vpop.f32.mrb[6].mxu1  ;;  %v538_v10 = vadd.f32 %v1833_v58, %v537_v5 }
 0x232   : > { %v549_v8 = vadd.f32 %v1926_v6, %v1833_v58  ;;  %v540_v9 = vpop.f32.mrb[7].mxu1 }
 0x233   : > { %v541_v11 = vadd.f32 %v1833_v58, %v540_v9 }
 0x234   : > { %v2327_v12 = vpack.c.bf16 %v549_v8, %v546_v7 }
 0x235   : > { %v2329_v13 = vpack.c.bf16 %v541_v11, %v538_v10 }
 0x237   : > { %658 = vrot.lane.b32.xlu1 %v2329_v13, %s2167_s20 }
 0x23b   : > { %708 = vrot.lane.b32.xlu1 %v2327_v12, %s2167_s20 }
 0x2a0   : > { %v609_v16 = vpop.permute.xlu1 %608 }
 0x2a1   : > { %v558_v14 = vpop.permute.xlu0 %557  ;;  %v614_v18 = vsel %vm559_vm3, %v609_v16, 0 }
 0x2a2   : > { %v564_v15 = vsel %vm559_vm3, %v558_v14, 0 }
 0x2a3   : > { %1928 = vmatpush3.bf16.xpose.msra.mxu1 %v564_v15 }
 0x2a4   : > { %1933 = vmatprep.subr.bf16.mxu1 %v2165_v48 }
 0x2a9   : > { %v659_v17 = vpop.permute.xlu1 %658 }
 0x2aa   : > { %1930 = vmatmul.mubr.msk.bf16.vlgmr.msra.gmra.mrb[8].mxu1 %vm559_vm3, %v2323_v3  ;;  %v664_v19 = vsel %vm559_vm3, %v659_v17, 0 }
 0x2ab   : > { %1934 = vmatpush3.bf16.xpose.msra.mxu1 %v614_v18  ;;  %1940 = vmatpush3.bf16.xpose.msra.mxu0 %v664_v19 }
 0x2ac   : > { %1935 = vmatprep.mubr.msk.bf16.mxu1 %vm2166_vm2, %v2165_v48  ;;  %1945 = vmatprep.subr.bf16.mxu1 %v2165_v48 }
 0x2ad   : > { %1951 = vmatprep.subr.bf16.mxu0 %v2165_v48  ;;  %v709_v22 = vpop.permute.xlu1 %708 }
 0x2ae   : > { %v714_v23 = vsel %vm559_vm3, %v709_v22, 0 }
 0x2b2   : > { %1936 = vmatmul.mubr.msk.bf16.vlgmr.msra.gmra.mrb[12].mxu1 %vm559_vm3, %v2321_v2  ;;  %1942 = vmatmul.mubr.msk.bf16.vlgmr.msra.gmra.mrb[0].mxu0 %vm559_vm3, %v2329_v13 }
 0x2b3   : > { %1946 = vmatpush3.bf16.xpose.msra.mxu1 %v714_v23  ;;  %1947 = vmatprep.mubr.msk.bf16.mxu1 %vm2166_vm2, %v2165_v48 }
 0x2b4   : > { %1957 = vmatprep.subr.bf16.mxu1 %v2165_v48  ;;  %1953 = vmatprep.mubr.msk.bf16.mxu0 %vm2166_vm2, %v2165_v48 }
 0x2ba   : > { %1948 = vmatmul.mubr.msk.bf16.vlgmr.msra.gmra.mrb[16].mxu1 %vm559_vm3, %v2327_v12 }
 0x2bb   : > { %1959 = vmatprep.mubr.msk.bf16.mxu1 %vm2166_vm2, %v2165_v48 }
 0x37d   : > { %v600_v24 = vpop.f32.mrb[8].mxu1 }
 0x37e   : > { %v757_v26 = vmul.f32 0.5, %v600_v24  ;;  %v1931_v27 = vpop.f32.mrb[9].mxu1 }
 0x37f   : > { %v603_v20 = vpop.f32.mrb[10].mxu1 }
 0x380   : > { %v758_v31 = vmul.f32 0.5, %v603_v20  ;;  %v1932_v32 = vpop.f32.mrb[11].mxu1  ;;  %v767_v33 = vadd.f32 %v765_v25, %v757_v26 }
 0x382   : > { %v776_v34 = vsel %vm775_vm4, %v767_v33, -inf  ;;  %v768_v35 = vadd.f32 %v766_v30, %v758_v31 }
 0x383   : > { %777 = vmax.xlane.f32.xlu0 %v776_v34 }
 0x384   : > { %v779_v36 = vsel %vm775_vm4, %v768_v35, -inf }
 0x385   : > { %v700_v37 = vpop.f32.mrb[0].mxu0  ;;  %780 = vmax.xlane.f32.xlu1 %v779_v36  ;;  %v650_v40 = vpop.f32.mrb[12].mxu1 }
 0x386   : > { %v759_v28 = vmul.f32 0.5, %v650_v40  ;;  %v1937_v41 = vpop.f32.mrb[13].mxu1  ;;  %v1943_v42 = vpop.f32.mrb[1].mxu0  ;;  %v761_v50 = vmul.f32 0.5, %v700_v37 }
 0x387   : > { %v653_v21 = vpop.f32.mrb[14].mxu1  ;;  %v703_v43 = vpop.f32.mrb[2].mxu0 }
 0x388   : > { %v760_v44 = vmul.f32 0.5, %v653_v21  ;;  %v762_v45 = vmul.f32 0.5, %v703_v43  ;;  %v1938_v46 = vpop.f32.mrb[15].mxu1  ;;  %v1944_v47 = vpop.f32.mrb[3].mxu0  ;;  %v769_v29 = vadd.f32 %v765_v25, %v759_v28  ;;  %v771_v57 = vadd.f32 %v765_v25, %v761_v50 }
 0x38a   : > { %v782_v51 = vsel %vm775_vm4, %v769_v29, -inf  ;;  %v772_v38 = vadd.f32 %v766_v30, %v762_v45  ;;  %v770_v52 = vadd.f32 %v766_v30, %v760_v44  ;;  %v788_v60 = vsel %vm775_vm4, %v771_v57, -inf }
 0x38b   : > { %783 = vmax.xlane.f32.xlu0 %v782_v51 }
 0x38c   : > { %v791_v53 = vsel %vm775_vm4, %v772_v38, -inf  ;;  %v785_v56 = vsel %vm775_vm4, %v770_v52, -inf }
 0x38d   : > { %792 = vmax.xlane.f32.xlu1 %v791_v53  ;;  %v750_v54 = vpop.f32.mrb[16].mxu1 }
 0x38e   : > { %v763_v55 = vmul.f32 0.5, %v750_v54  ;;  %v1949_v39 = vpop.f32.mrb[17].mxu1 }
 0x38f   : > { %786 = vmax.xlane.f32.xlu0 %v785_v56  ;;  %v753_v49 = vpop.f32.mrb[18].mxu1 }
 0x390   : > { %v764_v58 = vmul.f32 0.5, %v753_v49  ;;  %v1950_v59 = vpop.f32.mrb[19].mxu1  ;;  %v773_v61 = vadd.f32 %v765_v25, %v763_v55 }
 0x392   : > { %v2369_v62 = vadd.f32 %v766_v30, %v764_v58  ;;  %v794_v63 = vsel %vm775_vm4, %v773_v61, -inf }
 0x393   : > { %789 = vmax.xlane.f32.xlu0 %v788_v60 }
 0x394   : > { %v797_v0 = vsel %vm775_vm4, %v2369_v62, -inf }
 0x397   : > { %795 = vmax.xlane.f32.xlu0 %v794_v63 }
 0x39e   : > { %915 = vrot.lane.b32.xlu1 %v2321_v2, %s2168_s25 }
 0x3a2   : > { %962 = vrot.lane.b32.xlu1 %v2329_v13, %s2168_s25 }
 0x3ad   : > { %868 = vrot.lane.b32.xlu0 %v2323_v3, %s2168_s25 }
 0x3c6   : > { %798 = vmax.xlane.f32.xlu1 %v797_v0 }
 0x3d7   : > { %1009 = vrot.lane.b32.xlu1 %v2327_v12, %s2168_s25 }
 0x410   : > { %v778_v1 = vpop.xlane.xlu0 %777 }
 0x411   : > { %v800_v4 = vsub.f32 %v767_v33, %v778_v1 }
 0x412   : > { %v781_v5 = vpop.xlane.xlu1 %780 }
 0x413   : > { %v808_v6 = vmul.f32 1.442695, %v800_v4  ;;  %v801_v7 = vsub.f32 %v768_v35, %v781_v5 }
 0x415   : > { %2085 = vpow2.f32 %v808_v6  ;;  %v810_v8 = vmul.f32 1.442695, %v801_v7 }
 0x417   : > { %2087 = vpow2.f32 %v810_v8 }
 0x418   : > { %v784_v9 = vpop.xlane.xlu0 %783 }
 0x419   : > { %v802_v10 = vsub.f32 %v769_v29, %v784_v9 }
 0x41a   : > { %v793_v11 = vpop.xlane.xlu1 %792 }
 0x41b   : > { %v812_v14 = vmul.f32 1.442695, %v802_v10  ;;  %v805_v15 = vsub.f32 %v772_v38, %v793_v11 }
 0x41c   : > { %v787_v16 = vpop.xlane.xlu0 %786 }
 0x41d   : > { %2089 = vpow2.f32 %v812_v14  ;;  %v803_v17 = vsub.f32 %v770_v52, %v787_v16  ;;  %v818_v22 = vmul.f32 1.442695, %v805_v15 }
 0x41e   : > { %v916_v18 = vpop.permute.xlu1 %915 }
 0x41f   : > { %v2378_v19 = vpop.eup %2085  ;;  %v814_v23 = vmul.f32 1.442695, %v803_v17  ;;  %1958 = vmatpush3.bf16.msra.mxu1 %v916_v18 }
 0x420   : > { %v790_v24 = vpop.xlane.xlu0 %789  ;;  %v824_v25 = vsel %vm775_vm4, %v2378_v19, 0.0  ;;  %1969 = vmatprep.subr.bf16.mxu1 %v2165_v48 }
 0x421   : > { %v2088_v26 = vpop.eup %2087  ;;  %2091 = vpow2.f32 %v814_v23  ;;  %v804_v27 = vsub.f32 %v771_v57, %v790_v24  ;;  %825 = vadd.xlane.f32.xlu0 %v824_v25 }
 0x422   : > { %v827_v20 = vsel %vm775_vm4, %v2088_v26, 0.0  ;;  %2093 = vpow2.f32 %v818_v22  ;;  %v963_v45 = vpop.permute.xlu1 %962 }
 0x423   : > { %v816_v30 = vmul.f32 1.442695, %v804_v27  ;;  %828 = vadd.xlane.f32.xlu1 %v827_v20 }
 0x424   : > { %v796_v31 = vpop.xlane.xlu0 %795 }
 0x425   : > { %2095 = vpow2.f32 %v816_v30  ;;  %v806_v32 = vsub.f32 %v773_v61, %v796_v31 }
 0x427   : > { %v2090_v33 = vpop.eup %2089  ;;  %v820_v34 = vmul.f32 1.442695, %v806_v32 }
 0x428   : > { %v869_v35 = vpop.permute.xlu0 %868  ;;  %v830_v36 = vsel %vm775_vm4, %v2090_v33, 0.0 }
 0x429   : > { %2097 = vpow2.f32 %v820_v34  ;;  %831 = vadd.xlane.f32.xlu0 %v830_v36  ;;  %1952 = vmatpush3.bf16.msra.mxu0 %v869_v35 }
 0x42a   : > { %1963 = vmatprep.subr.bf16.mxu0 %v2165_v48 }
 0x42b   : > { %v2092_v37 = vpop.eup %2091 }
 0x42c   : > { %v833_v40 = vsel %vm775_vm4, %v2092_v37, 0.0  ;;  %v2094_v28 = vpop.eup %2093 }
 0x42d   : > { %834 = vadd.xlane.f32.xlu1 %v833_v40  ;;  %v839_v21 = vsel %vm775_vm4, %v2094_v28, 0.0 }
 0x42f   : > { %v2096_v41 = vpop.eup %2095 }
 0x430   : > { %v836_v42 = vsel %vm775_vm4, %v2096_v41, 0.0 }
 0x431   : > { %837 = vadd.xlane.f32.xlu0 %v836_v42  ;;  %840 = vadd.xlane.f32.xlu1 %v839_v21 }
 0x433   : > { %v2389_v43 = vpop.eup %2097 }
 0x434   : > { %v842_v44 = vsel %vm775_vm4, %v2389_v43, 0.0 }
 0x435   : > { %843 = vadd.xlane.f32.xlu0 %v842_v44 }
 0x442   : > { %1114 = vrot.lane.b32.xlu1 %v2321_v2, %s2169_s26 }
 0x44b   : > { %1063 = vrot.lane.b32.xlu0 %v2323_v3, %s2169_s26 }
 0x44f   : > { %1061 = vrot.lane.b32.xlu0 %v2323_v3, %s2170_s28 }
 0x453   : > { %1112 = vrot.lane.b32.xlu0 %v2321_v2, %s2170_s28  ;;  %v799_v46 = vpop.xlane.xlu1 %798 }
 0x454   : > { %v807_v47 = vsub.f32 %v2369_v62, %v799_v46 }
 0x456   : > { %v822_v29 = vmul.f32 1.442695, %v807_v47 }
 0x457   : > { %1163 = vrot.lane.b32.xlu0 %v2329_v13, %s2170_s28  ;;  %v1010_v38 = vpop.permute.xlu1 %1009 }
 0x458   : > { %2099 = vpow2.f32 %v822_v29 }
 0x462   : > { %v2399_v50 = vpop.eup %2099 }
 0x463   : > { %v845_v51 = vsel %vm775_vm4, %v2399_v50, 0.0 }
 0x466   : > { %846 = vadd.xlane.f32.xlu1 %v845_v51 }
 0x477   : > { %1165 = vrot.lane.b32.xlu1 %v2329_v13, %s2169_s26 }
 0x47b   : > { %1216 = vrot.lane.b32.xlu1 %v2327_v12, %s2169_s26 }
 0x47f   : > { %1214 = vrot.lane.b32.xlu1 %v2327_v12, %s2170_s28 }
 0x4ae   : > { %v826_v52 = vpop.xlane.xlu0 %825 }
 0x4af   : > { %2101 = vrcp.f32 %v826_v52 }
 0x4b0   : > { %v829_v53 = vpop.xlane.xlu1 %828 }
 0x4b1   : > { %2103 = vrcp.f32 %v829_v53  ;;  %v1851_v53 = vld [vmem:[%s2585_s7 + $0x18] sm:$0xff] }
 0x4b6   : > { %v832_v54 = vpop.xlane.xlu0 %831 }
 0x4b7   : > { %2105 = vrcp.f32 %v832_v54 }
 0x4b9   : > { %v2102_v55 = vpop.eup %2101 }
 0x4ba   : > { %v835_v39 = vpop.xlane.xlu1 %834  ;;  %v856_v57 = vmul.f32 %v2102_v55, %v2378_v19 }
 0x4bb   : > { %v2104_v56 = vpop.eup %2103  ;;  %2107 = vrcp.f32 %v835_v39 }
 0x4bc   : > { %v857_v49 = vmul.f32 %v2104_v56, %v2088_v26 }
 0x4be   : > { %v838_v58 = vpop.xlane.xlu0 %837  ;;  %v841_v59 = vpop.xlane.xlu1 %840  ;;  %v864_v60 = vpack.c.bf16 %v857_v49, %v856_v57 }
 0x4bf   : > { %2109 = vrcp.f32 %v838_v58 }
 0x4c0   : > { %2111 = vrcp.f32 %v841_v59  ;;  %1954 = vmatmul.mubr.msk.bf16.vlgmr.msra.gmra.mrb[4].mxu0 %vm775_vm4, %v864_v60 }
 0x4c1   : > { %1964 = vmatpush3.bf16.msra.mxu0 %v963_v45  ;;  %1965 = vmatprep.mubr.msk.bf16.mxu0 %vm2166_vm2, %v2165_v48  ;;  %v2106_v61 = vpop.eup %2105 }
 0x4c2   : > { %1975 = vmatprep.subr.bf16.mxu0 %v2165_v48  ;;  %v858_v63 = vmul.f32 %v2106_v61, %v2090_v33  ;;  %v844_v1 = vpop.xlane.xlu0 %843  ;;  %v1115_v15 = vpop.permute.xlu1 %1114 }
 0x4c3   : > { %2113 = vrcp.f32 %v844_v1  ;;  %v1120_v20 = vsel %vm559_vm3, %v1115_v15, 0 }
 0x4c5   : > { %v2108_v62 = vpop.eup %2107 }
 0x4c6   : > { %v859_v0 = vmul.f32 %v2108_v62, %v2092_v37  ;;  %v1064_v9 = vpop.permute.xlu0 %1063 }
 0x4c7   : > { %v1069_v11 = vsel %vm559_vm3, %v1064_v9, 0 }
 0x4c8   : > { %v865_v4 = vpack.c.bf16 %v859_v0, %v858_v63 }
 0x4c9   : > { %v2110_v5 = vpop.eup %2109 }
 0x4ca   : > { %v2112_v6 = vpop.eup %2111  ;;  %v860_v7 = vmul.f32 %v2110_v5, %v2096_v41  ;;  %1960 = vmatmul.mubr.msk.bf16.vlgmr.msra.gmra.mrb[20].mxu1 %vm775_vm4, %v865_v4  ;;  %v1062_v14 = vpop.permute.xlu0 %1061 }
 0x4cb   : > { %v861_v8 = vmul.f32 %v2112_v6, %v2094_v28  ;;  %1970 = vmatpush3.bf16.msra.mxu1 %v1010_v38  ;;  %1971 = vmatprep.mubr.msk.bf16.mxu1 %vm2166_vm2, %v2165_v48 }
 0x4cc   : > { %1981 = vmatprep.subr.bf16.mxu1 %v2165_v48 }
 0x4cd   : > { %v866_v10 = vpack.c.bf16 %v861_v8, %v860_v7  ;;  %v2114_v22 = vpop.eup %2113 }
 0x4ce   : > { %v1113_v19 = vpop.permute.xlu0 %1112  ;;  %v862_v24 = vmul.f32 %v2114_v22, %v2389_v43 }
 0x4cf   : > { %1966 = vmatmul.mubr.msk.bf16.vlgmr.msra.gmra.mrb[8].mxu0 %vm775_vm4, %v866_v10 }
 0x4d0   : > { %1976 = vmatpush3.bf16.xpose.msra.mxu0 %v1069_v11  ;;  %1977 = vmatprep.mubr.msk.bf16.mxu0 %vm2166_vm2, %v2165_v48 }
 0x4d1   : > { %1987 = vmatprep.subr.bf16.mxu0 %v2165_v48 }
 0x4d2   : > { %v1164_v25 = vpop.permute.xlu0 %1163 }
 0x4d7   : > { %1978 = vmatmul.mubr.msk.bf16.vlgmr.msra.gmra.mrb[12].mxu0 %vm559_vm3, %v1062_v14 }
 0x4d8   : > { %1989 = vmatprep.mubr.msk.bf16.mxu0 %vm2166_vm2, %v2165_v48 }
 0x4f3   : > { %v847_v16 = vpop.xlane.xlu1 %846 }
 0x4f4   : > { %2115 = vrcp.f32 %v847_v16 }
 0x4f7   : > { %v1166_v17 = vpop.permute.xlu1 %1165 }
 0x4f8   : > { %v1171_v18 = vsel %vm559_vm3, %v1166_v17, 0 }
 0x4f9   : > { %1988 = vmatpush3.bf16.xpose.msra.mxu0 %v1171_v18 }
 0x4fa   : > { %1999 = vmatprep.subr.bf16.mxu0 %v2165_v48 }
 0x4fb   : > { %v1217_v30 = vpop.permute.xlu1 %1216 }
 0x4fc   : > { %v1222_v31 = vsel %vm559_vm3, %v1217_v30, 0 }
 0x4fe   : > { %v2116_v23 = vpop.eup %2115 }
 0x4ff   : > { %v863_v26 = vmul.f32 %v2116_v23, %v2399_v50  ;;  %v1215_v32 = vpop.permute.xlu1 %1214  ;;  %v1850_v50 = vld [vmem:[%s2585_s7 + $0x10] sm:$0xff] }
 0x500   : > { %1990 = vmatmul.mubr.msk.bf16.vlgmr.msra.gmra.mrb[16].mxu0 %vm559_vm3, %v1164_v25 }
 0x501   : > { %v867_v27 = vpack.c.bf16 %v863_v26, %v862_v24  ;;  %2001 = vmatprep.mubr.msk.bf16.mxu0 %vm2166_vm2, %v2165_v48 }
 0x503   : > { %1972 = vmatmul.mubr.msk.bf16.vlgmr.msra.gmra.mrb[24].mxu1 %vm775_vm4, %v867_v27 }
 0x504   : > { %1982 = vmatpush3.bf16.xpose.msra.mxu1 %v1120_v20  ;;  %1983 = vmatprep.mubr.msk.bf16.mxu1 %vm2166_vm2, %v2165_v48 }
 0x505   : > { %1993 = vmatprep.subr.bf16.mxu1 %v2165_v48 }
 0x50b   : > { %1984 = vmatmul.mubr.msk.bf16.vlgmr.msra.gmra.mrb[28].mxu1 %vm559_vm3, %v1113_v19 }
 0x50c   : > { %1994 = vmatpush3.bf16.xpose.msra.mxu1 %v1222_v31  ;;  %1995 = vmatprep.mubr.msk.bf16.mxu1 %vm2166_vm2, %v2165_v48 }
 0x50d   : > { %2005 = vmatprep.subr.bf16.mxu1 %v2165_v48 }
 0x513   : > { %1996 = vmatmul.mubr.msk.bf16.vlgmr.msra.gmra.mrb[32].mxu1 %vm559_vm3, %v1215_v32 }
 0x514   : > { %2007 = vmatprep.mubr.msk.bf16.mxu1 %vm2166_vm2, %v2165_v48 }
 0x593   : > { %v2443_v33 = vpop.f32.mrb[4].mxu0 }
 0x594   : > { %v1955_v34 = vpop.f32.mrb[5].mxu0 }
 0x595   : > { %v2445_v35 = vpop.f32.mrb[6].mxu0 }
 0x596   : > { %v1056_v36 = vpack.c.bf16 %v2445_v35, %v2443_v33  ;;  %v1956_v37 = vpop.f32.mrb[7].mxu0  ;;  %v1865_v33 = vld [vmem:[%s2584_s6] ss:$0 sm:$0xff] }
 0x59d   : > { %v2449_v40 = vpop.f32.mrb[20].mxu1 }
 0x59e   : > { %v1961_v28 = vpop.f32.mrb[21].mxu1 }
 0x59f   : > { %v2451_v41 = vpop.f32.mrb[22].mxu1 }
 0x5a0   : > { %v1057_v42 = vpack.c.bf16 %v2451_v41, %v2449_v40  ;;  %v1962_v21 = vpop.f32.mrb[23].mxu1 }
 0x5a2   : > { %v2455_v43 = vpop.f32.mrb[8].mxu0 }
 0x5a3   : > { %v1967_v44 = vpop.f32.mrb[9].mxu0 }
 0x5a4   : > { %v2457_v45 = vpop.f32.mrb[10].mxu0 }
 0x5a5   : > { %v1058_v46 = vpack.c.bf16 %v2457_v45, %v2455_v43  ;;  %v1968_v47 = vpop.f32.mrb[11].mxu0 }
 0x5aa   : > { %v1105_v29 = vpop.f32.mrb[12].mxu0 }
 0x5ab   : > { %v1265_v51 = vmul.f32 0.5, %v1105_v29  ;;  %v1979_v38 = vpop.f32.mrb[13].mxu0 }
 0x5ac   : > { %v1108_v52 = vpop.f32.mrb[14].mxu0 }
 0x5ad   : > { %v1266_v54 = vmul.f32 0.5, %v1108_v52  ;;  %v1980_v55 = vpop.f32.mrb[15].mxu0  ;;  %v1276_v39 = vadd.f32 %v1850_v50, %v1265_v51 }
 0x5af   : > { %v1284_v56 = vsel %vm775_vm4, %v1276_v39, -inf  ;;  %v1277_v57 = vadd.f32 %v1851_v53, %v1266_v54 }
 0x5b0   : > { %1285 = vmax.xlane.f32.xlu0 %v1284_v56 }
 0x5b1   : > { %v1287_v49 = vsel %vm775_vm4, %v1277_v57, -inf }
 0x5b2   : > { %1288 = vmax.xlane.f32.xlu1 %v1287_v49 }
 0x5d3   : > { %v1207_v58 = vpop.f32.mrb[16].mxu0 }
 0x5d4   : > { %v1991_v59 = vpop.f32.mrb[17].mxu0  ;;  %v1269_v17 = vmul.f32 0.5, %v1207_v58 }
 0x5d5   : > { %v1210_v60 = vpop.f32.mrb[18].mxu0 }
 0x5d6   : > { %v1270_v61 = vmul.f32 0.5, %v1210_v60  ;;  %v2469_v62 = vpop.f32.mrb[24].mxu1  ;;  %v1992_v63 = vpop.f32.mrb[19].mxu0  ;;  %v1280_v26 = vadd.f32 %v1850_v50, %v1269_v17 }
 0x5d7   : > { %v1973_v0 = vpop.f32.mrb[25].mxu1 }
 0x5d8   : > { %v2471_v1 = vpop.f32.mrb[26].mxu1  ;;  %v1281_v4 = vadd.f32 %v1851_v53, %v1270_v61  ;;  %v1296_v32 = vsel %vm775_vm4, %v1280_v26, -inf }
 0x5d9   : > { %v1059_v5 = vpack.c.bf16 %v2471_v1, %v2469_v62  ;;  %v1974_v6 = vpop.f32.mrb[27].mxu1 }
 0x5da   : > { %v1299_v7 = vsel %vm775_vm4, %v1281_v4, -inf }
 0x5db   : > { %1300 = vmax.xlane.f32.xlu1 %v1299_v7 }
 0x5de   : > { %v1156_v8 = vpop.f32.mrb[28].mxu1 }
 0x5df   : > { %v1267_v9 = vmul.f32 0.5, %v1156_v8  ;;  %v1985_v10 = vpop.f32.mrb[29].mxu1 }
 0x5e0   : > { %v1159_v11 = vpop.f32.mrb[30].mxu1 }
 0x5e1   : > { %v1268_v14 = vmul.f32 0.5, %v1159_v11  ;;  %v1986_v15 = vpop.f32.mrb[31].mxu1  ;;  %v1278_v16 = vadd.f32 %v1850_v50, %v1267_v9 }
 0x5e3   : > { %v1290_v18 = vsel %vm775_vm4, %v1278_v16, -inf  ;;  %v1279_v19 = vadd.f32 %v1851_v53, %v1268_v14 }
 0x5e4   : > { %1291 = vmax.xlane.f32.xlu0 %v1290_v18 }
 0x5e5   : > { %v1293_v25 = vsel %vm775_vm4, %v1279_v19, -inf }
 0x5e6   : > { %v1258_v22 = vpop.f32.mrb[32].mxu1 }
 0x5e7   : > { %v1271_v23 = vmul.f32 0.5, %v1258_v22  ;;  %v1997_v24 = vpop.f32.mrb[33].mxu1 }
 0x5e8   : > { %1294 = vmax.xlane.f32.xlu0 %v1293_v25  ;;  %v1261_v27 = vpop.f32.mrb[34].mxu1 }
 0x5e9   : > { %v1272_v20 = vmul.f32 0.5, %v1261_v27  ;;  %v1998_v30 = vpop.f32.mrb[35].mxu1  ;;  %v1282_v31 = vadd.f32 %v1850_v50, %v1271_v23 }
 0x5eb   : > { %v1283_v34 = vadd.f32 %v1851_v53, %v1272_v20  ;;  %v1302_v28 = vsel %vm775_vm4, %v1282_v31, -inf }
 0x5ec   : > { %1297 = vmax.xlane.f32.xlu0 %v1296_v32 }
 0x5ed   : > { %v1305_v37 = vsel %vm775_vm4, %v1283_v34, -inf }
 0x5ee   : > { %1306 = vmax.xlane.f32.xlu1 %v1305_v37 }
 0x5f0   : > { %1303 = vmax.xlane.f32.xlu0 %v1302_v28 }
 0x63d   : > { %v1286_v21 = vpop.xlane.xlu0 %1285 }
 0x63e   : > { %v1308_v44 = vsub.f32 %v1276_v39, %v1286_v21 }
 0x63f   : > { %v1289_v47 = vpop.xlane.xlu1 %1288 }
 0x640   : > { %v1316_v29 = vmul.f32 1.442695, %v1308_v44  ;;  %v1309_v51 = vsub.f32 %v1277_v57, %v1289_v47 }
 0x642   : > { %2117 = vpow2.f32 %v1316_v29  ;;  %v1318_v38 = vmul.f32 1.442695, %v1309_v51 }
 0x644   : > { %2119 = vpow2.f32 %v1318_v38 }
 0x64c   : > { %v2481_v52 = vpop.eup %2117 }
 0x64d   : > { %v1332_v50 = vsel %vm775_vm4, %v2481_v52, 0.0 }
 0x64e   : > { %v2485_v53 = vpop.eup %2119  ;;  %1333 = vadd.xlane.f32.xlu0 %v1332_v50 }
 0x64f   : > { %v1335_v54 = vsel %vm775_vm4, %v2485_v53, 0.0 }
 0x650   : > { %1336 = vadd.xlane.f32.xlu1 %v1335_v54 }
 0x668   : > { %v1301_v55 = vpop.xlane.xlu1 %1300 }
 0x669   : > { %v1313_v49 = vsub.f32 %v1281_v4, %v1301_v55 }
 0x66b   : > { %v1326_v60 = vmul.f32 1.442695, %v1313_v49 }
 0x671   : > { %v1292_v39 = vpop.xlane.xlu0 %1291 }
 0x672   : > { %v1310_v56 = vsub.f32 %v1278_v16, %v1292_v39 }
 0x674   : > { %v1320_v57 = vmul.f32 1.442695, %v1310_v56 }
 0x675   : > { %v1295_v58 = vpop.xlane.xlu0 %1294 }
 0x676   : > { %2121 = vpow2.f32 %v1320_v57  ;;  %v1311_v59 = vsub.f32 %v1279_v19, %v1295_v58 }
 0x678   : > { %v1322_v61 = vmul.f32 1.442695, %v1311_v59 }
 0x679   : > { %v1298_v63 = vpop.xlane.xlu0 %1297 }
 0x67a   : > { %2123 = vpow2.f32 %v1322_v61  ;;  %v1312_v0 = vsub.f32 %v1280_v26, %v1298_v63 }
 0x67b   : > { %2125 = vpow2.f32 %v1326_v60  ;;  %v1307_v23 = vpop.xlane.xlu1 %1306 }
 0x67c   : > { %v1324_v6 = vmul.f32 1.442695, %v1312_v0  ;;  %v1315_v24 = vsub.f32 %v1283_v34, %v1307_v23 }
 0x67d   : > { %v1304_v7 = vpop.xlane.xlu0 %1303 }
 0x67e   : > { %2127 = vpow2.f32 %v1324_v6  ;;  %v1314_v8 = vsub.f32 %v1282_v31, %v1304_v7  ;;  %v1330_v25 = vmul.f32 1.442695, %v1315_v24  ;;  %v1060_v7 = vld [vmem:[%s2583_s5] sm:$0x3] }
 0x680   : > { %v2122_v9 = vpop.eup %2121  ;;  %v1328_v10 = vmul.f32 1.442695, %v1314_v8  ;;  %v1664_v8 = vsel %vm1582_vm5, %v1060_v7, 0 }
 0x681   : > { %v1338_v11 = vsel %vm775_vm4, %v2122_v9, 0.0 }
 0x682   : > { %2129 = vpow2.f32 %v1328_v10  ;;  %1339 = vadd.xlane.f32.xlu0 %v1338_v11 }
 0x683   : > { %2131 = vpow2.f32 %v1330_v25 }
 0x684   : > { %v2124_v4 = vpop.eup %2123 }
 0x685   : > { %v1341_v14 = vsel %vm775_vm4, %v2124_v4, 0.0  ;;  %v2126_v15 = vpop.eup %2125 }
 0x686   : > { %1342 = vadd.xlane.f32.xlu1 %v1341_v14  ;;  %v1347_v18 = vsel %vm775_vm4, %v2126_v15, 0.0 }
 0x688   : > { %v2128_v16 = vpop.eup %2127 }
 0x689   : > { %v1344_v17 = vsel %vm775_vm4, %v2128_v16, 0.0 }
 0x68a   : > { %1345 = vadd.xlane.f32.xlu0 %v1344_v17  ;;  %1348 = vadd.xlane.f32.xlu1 %v1347_v18 }
 0x68c   : > { %v2493_v19 = vpop.eup %2129 }
 0x68d   : > { %v1350_v22 = vsel %vm775_vm4, %v2493_v19, 0.0  ;;  %v2132_v26 = vpop.eup %2131 }
 0x68e   : > { %1351 = vadd.xlane.f32.xlu0 %v1350_v22  ;;  %v1353_v27 = vsel %vm775_vm4, %v2132_v26, 0.0 }
 0x69b   : > { %1423 = vrot.lane.b32.xlu1 %v2321_v2, %s2171_s14 }
 0x69f   : > { %1470 = vrot.lane.b32.xlu1 %v2329_v13, %s2171_s14 }
 0x6a4   : > { %1376 = vrot.lane.b32.xlu0 %v2323_v3, %s2171_s14 }
 0x6c3   : > { %1354 = vadd.xlane.f32.xlu1 %v1353_v27 }
 0x6d4   : > { %1517 = vrot.lane.b32.xlu1 %v2327_v12, %s2171_s14 }
 0x6db   : > { %v1334_v20 = vpop.xlane.xlu0 %1333 }
 0x6dd   : > { %v1337_v30 = vpop.xlane.xlu1 %1336 }
 0x6de   : > { %2133 = vrcp.f32 %v1337_v30 }
 0x6df   : > { %2135 = vrcp.f32 %v1334_v20 }
 0x6e8   : > { %v2134_v32 = vpop.eup %2133 }
 0x6e9   : > { %v2136_v34 = vpop.eup %2135  ;;  %v1365_v12 = vmul.f32 %v2134_v32, %v2485_v53 }
 0x6ea   : > { %v1364_v47 = vmul.f32 %v2136_v34, %v2481_v52  ;;  %v2152_v34 = vld [vmem:[%s2233_s11 + $0x18] sm:$0xff] }
 0x6ec   : > { %v1372_v50 = vpack.c.bf16 %v1365_v12, %v1364_v47 }
 0x70f   : > { %v1340_v31 = vpop.xlane.xlu0 %1339 }
 0x710   : > { %2137 = vrcp.f32 %v1340_v31 }
 0x713   : > { %v1343_v2 = vpop.xlane.xlu1 %1342 }
 0x714   : > { %2139 = vrcp.f32 %v1343_v2 }
 0x717   : > { %v1346_v13 = vpop.xlane.xlu0 %1345  ;;  %v1349_v3 = vpop.xlane.xlu1 %1348 }
 0x718   : > { %2141 = vrcp.f32 %v1346_v13 }
 0x719   : > { %2143 = vrcp.f32 %v1349_v3  ;;  %v2151_v3 = vld [vmem:[%s2233_s11 + $0x8] sm:$0xff] }
 0x71a   : > { %v2138_v21 = vpop.eup %2137 }
 0x71b   : > { %v1352_v37 = vpop.xlane.xlu0 %1351  ;;  %v1424_v28 = vpop.permute.xlu1 %1423  ;;  %v1366_v29 = vmul.f32 %v2138_v21, %v2122_v9 }
 0x71c   : > { %2006 = vmatpush3.bf16.msra.mxu1 %v1424_v28  ;;  %2145 = vrcp.f32 %v1352_v37 }
 0x71d   : > { %2017 = vmatprep.subr.bf16.mxu1 %v2165_v48 }
 0x71e   : > { %v2140_v44 = vpop.eup %2139 }
 0x71f   : > { %v1367_v51 = vmul.f32 %v2140_v44, %v2124_v4  ;;  %v1377_v38 = vpop.permute.xlu0 %1376  ;;  %v1471_v56 = vpop.permute.xlu1 %1470 }
 0x720   : > { %2000 = vmatpush3.bf16.msra.mxu0 %v1377_v38  ;;  %v2153_v38 = vld [vmem:[%s2233_s11 + $0x20] sm:$0xff] }
 0x721   : > { %v1373_v54 = vpack.c.bf16 %v1367_v51, %v1366_v29  ;;  %2011 = vmatprep.subr.bf16.mxu0 %v2165_v48 }
 0x722   : > { %v2142_v55 = vpop.eup %2141 }
 0x723   : > { %v2144_v39 = vpop.eup %2143  ;;  %2002 = vmatmul.mubr.msk.bf16.vlgmr.msra.gmra.mrb[20].mxu0 %vm775_vm4, %v1372_v50  ;;  %2008 = vmatmul.mubr.msk.bf16.vlgmr.msra.gmra.mrb[36].mxu1 %vm775_vm4, %v1373_v54  ;;  %v1368_v52 = vmul.f32 %v2142_v55, %v2128_v16  ;;  %v2154_v55 = vld [vmem:[%s2233_s11 + $0x30] sm:$0xff] }
 0x724   : > { %2012 = vmatpush3.bf16.msra.mxu0 %v1471_v56  ;;  %2013 = vmatprep.mubr.msk.bf16.mxu0 %vm2166_vm2, %v2165_v48  ;;  %v1369_v53 = vmul.f32 %v2144_v39, %v2126_v15  ;;  %v2155_v56 = vld [vmem:[%s2233_s11 + $0x28] sm:$0xff] }
 0x725   : > { %2019 = vmatprep.mubr.msk.bf16.mxu1 %vm2166_vm2, %v2165_v48  ;;  %v1856_v48 = vld [vmem:[%s2583_s5 + $0x2] sm:$0x3] }
 0x726   : > { %v1374_v49 = vpack.c.bf16 %v1369_v53, %v1368_v52  ;;  %v2146_v59 = vpop.eup %2145  ;;  %2052 = vmatprep.subr.msk.bf16.mxu0 %vm1582_vm5, %v1856_v48  ;;  %v1584_v6 = vsel %vm1582_vm5, %v1856_v48, 0  ;;  %v2156_v53 = vld [vmem:[%s2233_s11 + $0x38] sm:$0xff] }
 0x727   : > { %v1370_v61 = vmul.f32 %v2146_v59, %v2493_v19 }
 0x72b   : > { %2014 = vmatmul.mubr.msk.bf16.vlgmr.msra.gmra.mrb[24].mxu0 %vm775_vm4, %v1374_v49 }
 0x72c   : > { %2024 = vmatpush3.bf16.msra.mxu0 %v1584_v6 }
 0x72d   : > { %2053 = vmatprep.subr.msk.bf16.mxu0 %vm1582_vm5, %v1060_v7 }
 0x750   : > { %v1355_v57 = vpop.xlane.xlu1 %1354 }
 0x751   : > { %2147 = vrcp.f32 %v1355_v57 }
 0x754   : > { %v1518_v58 = vpop.permute.xlu1 %1517 }
 0x755   : > { %2018 = vmatpush3.bf16.msra.mxu1 %v1518_v58 }
 0x75b   : > { %v2148_v60 = vpop.eup %2147 }
 0x75c   : > { %v1371_v63 = vmul.f32 %v2148_v60, %v2132_v26 }
 0x75e   : > { %v1375_v0 = vpack.c.bf16 %v1371_v63, %v1370_v61 }
 0x760   : > { %2020 = vmatmul.mubr.msk.bf16.vlgmr.msra.gmra.mrb[40].mxu1 %vm775_vm4, %v1375_v0 }
 0x7f6   : > { %v1416_v9 = vpop.f32.mrb[20].mxu0  ;;  %v1463_v10 = vpop.f32.mrb[36].mxu1 }
 0x7f7   : > { %v2003_v11 = vpop.f32.mrb[21].mxu0  ;;  %v2009_v4 = vpop.f32.mrb[37].mxu1 }
 0x7f8   : > { %v1419_v14 = vpop.f32.mrb[22].mxu0  ;;  %v1466_v15 = vpop.f32.mrb[38].mxu1 }
 0x7f9   : > { %v1564_v16 = vpack.c.bf16 %v1419_v14, %v1416_v9  ;;  %v1565_v17 = vpack.c.bf16 %v1466_v15, %v1463_v10  ;;  %v2004_v18 = vpop.f32.mrb[23].mxu0  ;;  %v2010_v19 = vpop.f32.mrb[39].mxu1 }
 0x7fb   : > { %2025 = vmatprep.mubr.msk.bf16.mxu0 %vm559_vm3, %v1564_v16 }
 0x7fc   : > { %2026 = vmatmul.mubr.msk.bf16.vlgmr.msra.gmra.mrb[28].mxu0 %vm559_vm3, %v1565_v17 }
 0x7fd   : > { %2034 = vmatpush3.bf16.msra.mxu0 %v1664_v8 }
 0x7fe   : > { %v1510_v22 = vpop.f32.mrb[24].mxu0 }
 0x7ff   : > { %v2015_v23 = vpop.f32.mrb[25].mxu0 }
 0x800   : > { %v1513_v24 = vpop.f32.mrb[26].mxu0 }
 0x801   : > { %v1566_v25 = vpack.c.bf16 %v1513_v24, %v1510_v22  ;;  %v2016_v26 = vpop.f32.mrb[27].mxu0 }
 0x803   : > { %2029 = vmatprep.mubr.msk.bf16.mxu0 %vm559_vm3, %v1566_v25 }
 0x833   : > { %v1557_v27 = vpop.f32.mrb[40].mxu1 }
 0x834   : > { %v2021_v20 = vpop.f32.mrb[41].mxu1 }
 0x835   : > { %v1560_v30 = vpop.f32.mrb[42].mxu1 }
 0x836   : > { %v1567_v31 = vpack.c.bf16 %v1560_v30, %v1557_v27  ;;  %v2022_v2 = vpop.f32.mrb[43].mxu1 }
 0x838   : > { %2030 = vmatmul.mubr.msk.bf16.gmra.mrb[32].mxu0 %vm559_vm3, %v1567_v31 }
 0x839   : > { %2035 = vmatprep.mubr.msk.bf16.mxu0 %vm559_vm3, %v1056_v36 }
 0x840   : > { %2036 = vmatmul.mubr.msk.bf16.vlgmr.msra.gmra.mrb[28].mxu0 %vm559_vm3, %v1057_v42 }
 0x841   : > { %2039 = vmatprep.mubr.msk.bf16.mxu0 %vm559_vm3, %v1058_v46  ;;  %v2149_v46 = vld [vmem:[%s2233_s11] sm:$0xff] }
 0x848   : > { %2040 = vmatmul.mubr.msk.bf16.gmra.mrb[32].mxu0 %vm559_vm3, %v1059_v5  ;;  %v2150_v5 = vld [vmem:[%s2233_s11 + $0x10] sm:$0xff] }
 0x913   : > { %v2037_v35 = vpop.f32.mrb[28].mxu0 }
 0x914   : > { %v1740_v36 = vadd.f32 %v2037_v35, %v1865_v33  ;;  %v1700_v40 = vpop.f32.mrb[29].mxu0 }
 0x915   : > { %v1738_v41 = vadd.f32 %v1865_v33, %v1700_v40  ;;  %v2038_v42 = vpop.f32.mrb[30].mxu0 }
 0x916   : > { %v1741_v43 = vadd.f32 %v2038_v42, %v1865_v33  ;;  %v1703_v45 = vpop.f32.mrb[31].mxu0  ;;  %v1748_v13 = vadd.f32 %v2150_v5, %v1740_v36 }
 0x917   : > { %v1746_v62 = vadd.f32 %v2149_v46, %v1738_v41  ;;  %v1739_v1 = vadd.f32 %v1865_v33, %v1703_v45 }
 0x918   : > { %1756 = vst.msk [vmem:[%s2549_s23 + $0x10] sm:$0xff] %vm323_vm0, %v1748_v13  ;;  %v1749_v37 = vadd.f32 %v2152_v34, %v1741_v43 }
 0x919   : > { %1754 = vst.msk [vmem:[%s2549_s23] sm:$0xff] %vm323_vm0, %v1746_v62  ;;  %v1747_v32 = vadd.f32 %v2151_v3, %v1739_v1 }
 0x91a   : > { %1757 = vst.msk [vmem:[%s2549_s23 + $0x18] sm:$0xff] %vm323_vm0, %v1749_v37 }
 0x91b   : > { %1755 = vst.msk [vmem:[%s2549_s23 + $0x8] sm:$0xff] %vm323_vm0, %v1747_v32  ;;  %v2041_v28 = vpop.f32.mrb[32].mxu0 }
 0x91c   : > { %v1744_v21 = vadd.f32 %v2041_v28, %v1865_v33  ;;  %v1716_v12 = vpop.f32.mrb[33].mxu0 }
 0x91d   : > { %v1742_v44 = vadd.f32 %v1865_v33, %v1716_v12  ;;  %v2042_v47 = vpop.f32.mrb[34].mxu0 }
 0x91e   : > { %v1745_v29 = vadd.f32 %v2042_v47, %v1865_v33  ;;  %v1719_v51 = vpop.f32.mrb[35].mxu0  ;;  %v1752_v39 = vadd.f32 %v2154_v55, %v1744_v21 }
 0x91f   : > { %v1750_v50 = vadd.f32 %v2153_v38, %v1742_v44  ;;  %v1743_v54 = vadd.f32 %v1865_v33, %v1719_v51 }
 0x920   : > { %1760 = vst.msk [vmem:[%s2549_s23 + $0x30] sm:$0xff] %vm323_vm0, %v1752_v39  ;;  %v1753_v49 = vadd.f32 %v2156_v53, %v1745_v29 }
 0x921   : > { %1758 = vst.msk [vmem:[%s2549_s23 + $0x20] sm:$0xff] %vm323_vm0, %v1750_v50  ;;  %v1751_v52 = vadd.f32 %v2155_v56, %v1743_v54 }
 0x922   : > { %1761 = vst.msk [vmem:[%s2549_s23 + $0x38] sm:$0xff] %vm323_vm0, %v1753_v49 }
 0x923   : > { %1759 = vst.msk [vmem:[%s2549_s23 + $0x28] sm:$0xff] %vm323_vm0, %v1751_v52 }
 0x924 PF: > { %s18_s27 = sadd.s32 1, %s2163_s27  }
 0x925   : > { %p15_p4 = scmp.ge.s32.totalorder %s18_s27, 4  }
 0x927   :  { %17 = sbr.rel (!%p15_p4) target bundleno = 1 (0x1), region = 84 }

</bundles_post_ra>
